<compile_context>
chip_gen: v5e
topology: v5e:2x2
jax: 0.10.0
libtpu: 0.0.40
codegen_flags: <defaults>
</compile_context>

<pallas_src>
import functools
import math

import jax
import jax.numpy as jnp
from jax.experimental import pallas as pl
from jax.experimental.pallas import tpu as pltpu


def _lstm_kernel(depth, hidden, seq_len, batch, *refs):
    # refs: x_ref, [w_sum, b_sum] * depth, w_out_col, b_out, out_ref
    x_ref = refs[0]
    layer_refs = [refs[1 + 2 * l: 3 + 2 * l] for l in range(depth)]
    w_out_ref, b_out_ref, out_ref = refs[1 + 2 * depth:]

    H, L, N = hidden, seq_len, batch
    R = L * N  # lanes, time-major: column index = t*N + n

    # Lane index, used to mask the wrapped lanes of each scan roll.
    col = jax.lax.broadcasted_iota(jnp.int32, (H, R), 1)

    src = x_ref[...]          # (F, R) for layer 0, (H, R) for deeper layers
    h_last = None
    for l in range(depth):
        w_ref, b_ref = layer_refs[l]

        # One MXU matmul per layer covering every timestep: (4H, in) @ (in, R).
        gates = jnp.dot(w_ref[...], src,
                        preferred_element_type=jnp.float32) + b_ref[...]

        # Gate rows are [i | f | o | g] (reordered in the wrapper):
        # sigmoid only on the first 3H rows, tanh only on the last H rows.
        # All slices are sublane-aligned (multiples of H).
        sg = jax.nn.sigmoid(gates[:3 * H, :])
        g = jnp.tanh(gates[3 * H:, :])
        ig = sg[:H, :] * g            # i*g hoisted out of the recurrence
        f = sg[H:2 * H, :]
        o = sg[2 * H:3 * H, :]

        # c_t = f_t * c_{t-1} + ig_t with c_{-1} = 0 (h never feeds back), i.e.
        # a first-order linear recurrence.  Hillis-Steele parallel prefix scan
        # over affine maps (a, b): c = a*c_prev + b, composed as
        # (a2,b2)∘(a1,b1) = (a2*a1, a2*b1 + b2).  ceil(log2 L) full-width
        # passes; shifts are lane rolls (XLU slot, nearly free), wrapped lanes
        # keep their old value (equivalent to composing with the identity).
        a, b = f, ig
        step = 1
        while step < L:
            lanes = step * N
            a_sh = pltpu.roll(a, lanes, axis=1)
            b_sh = pltpu.roll(b, lanes, axis=1)
            valid = col >= lanes
            b = jnp.where(valid, a * b_sh + b, b)
            a = jnp.where(valid, a * a_sh, a)
            step *= 2
        c_all = b                      # c for every timestep / batch column

        if l < depth - 1:
            # Whole hidden sequence for the next layer, kept in vregs: it is
            # already the next layer's matmul RHS (no VMEM scratch round-trip).
            src = o * jnp.tanh(c_all)
        else:
            # Last layer: only t = L-1 feeds the output head -> one N-lane tanh.
            last = (L - 1) * N
            h_last = o[:, last:last + N] * jnp.tanh(c_all[:, last:last + N])

    # Output head on VPU + XLU: (H,1) * (H,N) -> sublane-sum -> lane-dense (1,N).
    out_ref[...] = (jnp.sum(w_out_ref[...] * h_last, axis=0, keepdims=True)
                    + b_out_ref[...])


def init_params(key, input_size, lstm_depth, hidden):
    """Deterministic init matching PyTorch LSTMCell/Linear uniform(-1/sqrt(H), 1/sqrt(H))."""
    params = {"w_ih": [], "w_hh": [], "b_ih": [], "b_hh": []}
    k = 1.0 / math.sqrt(hidden)
    keys = jax.random.split(key, 4 * lstm_depth + 2)
    ki = 0
    for l in range(lstm_depth):
        in_dim = input_size if l == 0 else hidden
        params["w_ih"].append(jax.random.uniform(keys[ki], (4 * hidden, in_dim),
                                                 jnp.float32, -k, k)); ki += 1
        params["w_hh"].append(jax.random.uniform(keys[ki], (4 * hidden, hidden),
                                                 jnp.float32, -k, k)); ki += 1
        params["b_ih"].append(jax.random.uniform(keys[ki], (4 * hidden,),
                                                 jnp.float32, -k, k)); ki += 1
        params["b_hh"].append(jax.random.uniform(keys[ki], (4 * hidden,),
                                                 jnp.float32, -k, k)); ki += 1
    params["w_out"] = jax.random.uniform(keys[ki], (1, hidden), jnp.float32, -k, k); ki += 1
    params["b_out"] = jax.random.uniform(keys[ki], (1,), jnp.float32, -k, k)
    return params


def lstm_forward(x, params, hidden):
    """x: (N, L, input_size) -> (N, 1)."""
    N, L, F = x.shape
    depth = len(params["w_ih"])
    H = hidden

    # Transposed layout: feature/gate units on sublanes, time*batch on lanes
    # (column index = t*N + n), so each layer is one lane-dense matmul and the
    # time scan is a lane roll.
    x_t = jnp.transpose(x, (2, 1, 0)).reshape(F, L * N).astype(jnp.float32)

    def reorder_gates(m):  # rows [i | f | g | o] -> [i | f | o | g]
        return jnp.concatenate([m[:2 * H], m[3 * H:], m[2 * H:3 * H]], axis=0)

    flat_inputs = [x_t]
    for l in range(depth):
        w_ih = params["w_ih"][l].astype(jnp.float32)
        w_hh = params["w_hh"][l].astype(jnp.float32)
        if l == 0:
            w_sum = w_ih                   # (4H, F); h_prev is always zero
        else:
            w_sum = w_ih + w_hh            # (4H, H); input == h_prev (folded)
        b_sum = (params["b_ih"][l] + params["b_hh"][l]).astype(jnp.float32)
        flat_inputs += [reorder_gates(w_sum), reorder_gates(b_sum.reshape(4 * H, 1))]
    flat_inputs += [params["w_out"].reshape(H, 1).astype(jnp.float32),   # head column
                    params["b_out"].reshape(1, 1).astype(jnp.float32)]

    kernel = functools.partial(_lstm_kernel, depth, H, L, N)
    vmem_spec = pl.BlockSpec(memory_space=pltpu.MemorySpace.VMEM)
    out_row = pl.pallas_call(
        kernel,
        out_shape=jax.ShapeDtypeStruct((1, N), jnp.float32),   # lane-dense head output
        in_specs=[vmem_spec] * len(flat_inputs),
        out_specs=vmem_spec,
    )(*flat_inputs)
    return out_row.reshape(N, 1)


def lstm_ref(x, params, hidden):
    """Pure-JAX mirror of the PyTorch forward (for correctness check)."""
    N, L, _ = x.shape
    depth = len(params["w_ih"])
    H = hidden
    c = [jnp.zeros((N, H), jnp.float32) for _ in range(depth)]
    h_states = [jnp.zeros((N, H), jnp.float32) for _ in range(depth)]
    input_hidden = jnp.zeros((N, H), jnp.float32)

    def cell(x_in, h_prev, c_prev, l):
        gates = (x_in @ params["w_ih"][l].T + params["b_ih"][l]
                 + h_prev @ params["w_hh"][l].T + params["b_hh"][l])
        i = jax.nn.sigmoid(gates[:, :H]); f = jax.nn.sigmoid(gates[:, H:2 * H])
        g = jnp.tanh(gates[:, 2 * H:3 * H]); o = jax.nn.sigmoid(gates[:, 3 * H:])
        c_new = f * c_prev + i * g
        return o * jnp.tanh(c_new), c_new

    hidden_state = h_states[0]
    for t in range(L):
        x_t = x[:, t, :]
        h_states[0], c[0] = cell(x_t, input_hidden, c[0], 0)
        cell_input = h_states[0]
        if depth <= 1:
            hidden_state = h_states[0]
        else:
            for l in range(1, depth):
                hidden_state, c_new = cell(cell_input, h_states[l - 1], c[l], l)
                h_states[l] = hidden_state
                c[l] = c_new
                cell_input = hidden_state
    return hidden_state @ params["w_out"].T + params["b_out"]


if __name__ == "__main__":
    N, L, input_size, lstm_depth, hidden_layers = 2, 8, 4, 2, 32
    key = jax.random.PRNGKey(0)
    kx, kp = jax.random.split(key)
    x = jax.random.normal(kx, (N, L, input_size), jnp.float32)
    params = init_params(kp, input_size, lstm_depth, hidden_layers)

    out = jax.block_until_ready(lstm_forward(x, params, hidden_layers))
    ref = lstm_ref(x, params, hidden_layers)

    assert out.shape == (N, 1), out.shape
    # Folded (W_ih + W_hh)/(b_ih + b_hh), the parallel prefix scan and the
    # VPU/XLU output head differ from the two-matmul serial reference only by
    # f32 association order (~1e-7 per gate).
    assert jnp.allclose(out, ref, atol=5e-5, rtol=5e-5), (out, ref)
    print("KERNEL_OK")
</pallas_src>

<mosaic_0001>
module attributes {stable_mosaic.version = 11 : i64} {
  func.func @_lstm_kernel(%arg0: memref<4x16xf32, #tpu.memory_space<vmem>>, %arg1: memref<128x4xf32, #tpu.memory_space<vmem>>, %arg2: memref<128x1xf32, #tpu.memory_space<vmem>>, %arg3: memref<128x32xf32, #tpu.memory_space<vmem>>, %arg4: memref<128x1xf32, #tpu.memory_space<vmem>>, %arg5: memref<32x1xf32, #tpu.memory_space<vmem>>, %arg6: memref<1x1xf32, #tpu.memory_space<vmem>>, %arg7: memref<1x2xf32, #tpu.memory_space<vmem>>) attributes {dimension_semantics = [], scalar_prefetch = 0 : i64, scratch_operands = 0 : i64, tpu.core_type = #tpu.core_type<tc>} {
    %0 = tpu.iota {dimensions = array<i32: 1>} : vector<32x16xi32>
    %c0 = arith.constant 0 : index
    %c0_0 = arith.constant 0 : index
    %1 = vector.load %arg0[%c0, %c0_0] : memref<4x16xf32, #tpu.memory_space<vmem>>, vector<4x16xf32>
    %c0_1 = arith.constant 0 : index
    %c0_2 = arith.constant 0 : index
    %2 = vector.load %arg1[%c0_1, %c0_2] : memref<128x4xf32, #tpu.memory_space<vmem>>, vector<128x4xf32>
    %cst = arith.constant dense<0.000000e+00> : vector<128x16xf32>
    %3 = tpu.matmul %2, %1, %cst {dimension_numbers = #tpu.dot_dimension_numbers<[1], [0], [0], [1], [0, 0, 1, 1], [], []>} : vector<128x4xf32>, vector<4x16xf32>, vector<128x16xf32> -> vector<128x16xf32>
    %c0_3 = arith.constant 0 : index
    %c0_4 = arith.constant 0 : index
    %4 = vector.load %arg2[%c0_3, %c0_4] : memref<128x1xf32, #tpu.memory_space<vmem>>, vector<128x1xf32>
    %5 = vector.broadcast %4 : vector<128x1xf32> to vector<128x16xf32>
    %6 = arith.addf %3, %5 : vector<128x16xf32>
    %7 = vector.extract_strided_slice %6 {offsets = [0, 0], sizes = [96, 16], strides = [1, 1]} : vector<128x16xf32> to vector<96x16xf32>
    %8 = arith.negf %7 : vector<96x16xf32>
    %9 = math.exp %8 : vector<96x16xf32>
    %cst_5 = arith.constant 1.000000e+00 : f32
    %10 = vector.broadcast %cst_5 : f32 to vector<96x16xf32>
    %11 = arith.addf %10, %9 : vector<96x16xf32>
    %12 = arith.divf %10, %11 : vector<96x16xf32>
    %13 = vector.extract_strided_slice %6 {offsets = [96, 0], sizes = [32, 16], strides = [1, 1]} : vector<128x16xf32> to vector<32x16xf32>
    %14 = math.tanh %13 : vector<32x16xf32>
    %15 = vector.extract_strided_slice %12 {offsets = [0, 0], sizes = [32, 16], strides = [1, 1]} : vector<96x16xf32> to vector<32x16xf32>
    %16 = arith.mulf %15, %14 : vector<32x16xf32>
    %17 = vector.extract_strided_slice %12 {offsets = [32, 0], sizes = [32, 16], strides = [1, 1]} : vector<96x16xf32> to vector<32x16xf32>
    %18 = vector.extract_strided_slice %12 {offsets = [64, 0], sizes = [32, 16], strides = [1, 1]} : vector<96x16xf32> to vector<32x16xf32>
    %c2_i32 = arith.constant 2 : i32
    %19 = tpu.dynamic_rotate %17 by %c2_i32 dim 1 : vector<32x16xf32>, i32 -> vector<32x16xf32>
    %c2_i32_6 = arith.constant 2 : i32
    %20 = tpu.dynamic_rotate %16 by %c2_i32_6 dim 1 : vector<32x16xf32>, i32 -> vector<32x16xf32>
    %c2_i32_7 = arith.constant 2 : i32
    %21 = vector.broadcast %c2_i32_7 : i32 to vector<32x16xi32>
    %22 = arith.cmpi sge, %0, %21 : vector<32x16xi32>
    %23 = arith.mulf %17, %20 : vector<32x16xf32>
    %24 = arith.addf %23, %16 : vector<32x16xf32>
    %25 = arith.select %22, %24, %16 : vector<32x16xi1>, vector<32x16xf32>
    %26 = arith.mulf %17, %19 : vector<32x16xf32>
    %27 = arith.select %22, %26, %17 : vector<32x16xi1>, vector<32x16xf32>
    %c4_i32 = arith.constant 4 : i32
    %28 = tpu.dynamic_rotate %27 by %c4_i32 dim 1 : vector<32x16xf32>, i32 -> vector<32x16xf32>
    %c4_i32_8 = arith.constant 4 : i32
    %29 = tpu.dynamic_rotate %25 by %c4_i32_8 dim 1 : vector<32x16xf32>, i32 -> vector<32x16xf32>
    %c4_i32_9 = arith.constant 4 : i32
    %30 = vector.broadcast %c4_i32_9 : i32 to vector<32x16xi32>
    %31 = arith.cmpi sge, %0, %30 : vector<32x16xi32>
    %32 = arith.mulf %27, %29 : vector<32x16xf32>
    %33 = arith.addf %32, %25 : vector<32x16xf32>
    %34 = arith.select %31, %33, %25 : vector<32x16xi1>, vector<32x16xf32>
    %35 = arith.mulf %27, %28 : vector<32x16xf32>
    %36 = arith.select %31, %35, %27 : vector<32x16xi1>, vector<32x16xf32>
    %c8_i32 = arith.constant 8 : i32
    %37 = tpu.dynamic_rotate %34 by %c8_i32 dim 1 : vector<32x16xf32>, i32 -> vector<32x16xf32>
    %c8_i32_10 = arith.constant 8 : i32
    %38 = vector.broadcast %c8_i32_10 : i32 to vector<32x16xi32>
    %39 = arith.cmpi sge, %0, %38 : vector<32x16xi32>
    %40 = arith.mulf %36, %37 : vector<32x16xf32>
    %41 = arith.addf %40, %34 : vector<32x16xf32>
    %42 = arith.select %39, %41, %34 : vector<32x16xi1>, vector<32x16xf32>
    %43 = math.tanh %42 : vector<32x16xf32>
    %44 = arith.mulf %18, %43 : vector<32x16xf32>
    %c0_11 = arith.constant 0 : index
    %c0_12 = arith.constant 0 : index
    %45 = vector.load %arg3[%c0_11, %c0_12] : memref<128x32xf32, #tpu.memory_space<vmem>>, vector<128x32xf32>
    %cst_13 = arith.constant dense<0.000000e+00> : vector<128x16xf32>
    %46 = tpu.matmul %45, %44, %cst_13 {dimension_numbers = #tpu.dot_dimension_numbers<[1], [0], [0], [1], [0, 0, 1, 1], [], []>} : vector<128x32xf32>, vector<32x16xf32>, vector<128x16xf32> -> vector<128x16xf32>
    %c0_14 = arith.constant 0 : index
    %c0_15 = arith.constant 0 : index
    %47 = vector.load %arg4[%c0_14, %c0_15] : memref<128x1xf32, #tpu.memory_space<vmem>>, vector<128x1xf32>
    %48 = vector.broadcast %47 : vector<128x1xf32> to vector<128x16xf32>
    %49 = arith.addf %46, %48 : vector<128x16xf32>
    %50 = vector.extract_strided_slice %49 {offsets = [0, 0], sizes = [96, 16], strides = [1, 1]} : vector<128x16xf32> to vector<96x16xf32>
    %51 = arith.negf %50 : vector<96x16xf32>
    %52 = math.exp %51 : vector<96x16xf32>
    %cst_16 = arith.constant 1.000000e+00 : f32
    %53 = vector.broadcast %cst_16 : f32 to vector<96x16xf32>
    %54 = arith.addf %53, %52 : vector<96x16xf32>
    %55 = arith.divf %53, %54 : vector<96x16xf32>
    %56 = vector.extract_strided_slice %49 {offsets = [96, 0], sizes = [32, 16], strides = [1, 1]} : vector<128x16xf32> to vector<32x16xf32>
    %57 = math.tanh %56 : vector<32x16xf32>
    %58 = vector.extract_strided_slice %55 {offsets = [0, 0], sizes = [32, 16], strides = [1, 1]} : vector<96x16xf32> to vector<32x16xf32>
    %59 = arith.mulf %58, %57 : vector<32x16xf32>
    %60 = vector.extract_strided_slice %55 {offsets = [32, 0], sizes = [32, 16], strides = [1, 1]} : vector<96x16xf32> to vector<32x16xf32>
    %61 = vector.extract_strided_slice %55 {offsets = [64, 0], sizes = [32, 16], strides = [1, 1]} : vector<96x16xf32> to vector<32x16xf32>
    %c2_i32_17 = arith.constant 2 : i32
    %62 = tpu.dynamic_rotate %60 by %c2_i32_17 dim 1 : vector<32x16xf32>, i32 -> vector<32x16xf32>
    %c2_i32_18 = arith.constant 2 : i32
    %63 = tpu.dynamic_rotate %59 by %c2_i32_18 dim 1 : vector<32x16xf32>, i32 -> vector<32x16xf32>
    %c2_i32_19 = arith.constant 2 : i32
    %64 = vector.broadcast %c2_i32_19 : i32 to vector<32x16xi32>
    %65 = arith.cmpi sge, %0, %64 : vector<32x16xi32>
    %66 = arith.mulf %60, %63 : vector<32x16xf32>
    %67 = arith.addf %66, %59 : vector<32x16xf32>
    %68 = arith.select %65, %67, %59 : vector<32x16xi1>, vector<32x16xf32>
    %69 = arith.mulf %60, %62 : vector<32x16xf32>
    %70 = arith.select %65, %69, %60 : vector<32x16xi1>, vector<32x16xf32>
    %c4_i32_20 = arith.constant 4 : i32
    %71 = tpu.dynamic_rotate %70 by %c4_i32_20 dim 1 : vector<32x16xf32>, i32 -> vector<32x16xf32>
    %c4_i32_21 = arith.constant 4 : i32
    %72 = tpu.dynamic_rotate %68 by %c4_i32_21 dim 1 : vector<32x16xf32>, i32 -> vector<32x16xf32>
    %c4_i32_22 = arith.constant 4 : i32
    %73 = vector.broadcast %c4_i32_22 : i32 to vector<32x16xi32>
    %74 = arith.cmpi sge, %0, %73 : vector<32x16xi32>
    %75 = arith.mulf %70, %72 : vector<32x16xf32>
    %76 = arith.addf %75, %68 : vector<32x16xf32>
    %77 = arith.select %74, %76, %68 : vector<32x16xi1>, vector<32x16xf32>
    %78 = arith.mulf %70, %71 : vector<32x16xf32>
    %79 = arith.select %74, %78, %70 : vector<32x16xi1>, vector<32x16xf32>
    %c8_i32_23 = arith.constant 8 : i32
    %80 = tpu.dynamic_rotate %77 by %c8_i32_23 dim 1 : vector<32x16xf32>, i32 -> vector<32x16xf32>
    %c8_i32_24 = arith.constant 8 : i32
    %81 = vector.broadcast %c8_i32_24 : i32 to vector<32x16xi32>
    %82 = arith.cmpi sge, %0, %81 : vector<32x16xi32>
    %83 = arith.mulf %79, %80 : vector<32x16xf32>
    %84 = arith.addf %83, %77 : vector<32x16xf32>
    %85 = arith.select %82, %84, %77 : vector<32x16xi1>, vector<32x16xf32>
    %86 = vector.extract_strided_slice %61 {offsets = [0, 14], sizes = [32, 2], strides = [1, 1]} : vector<32x16xf32> to vector<32x2xf32>
    %87 = vector.extract_strided_slice %85 {offsets = [0, 14], sizes = [32, 2], strides = [1, 1]} : vector<32x16xf32> to vector<32x2xf32>
    %88 = math.tanh %87 : vector<32x2xf32>
    %89 = arith.mulf %86, %88 : vector<32x2xf32>
    %c0_25 = arith.constant 0 : index
    %c0_26 = arith.constant 0 : index
    %90 = vector.load %arg5[%c0_25, %c0_26] : memref<32x1xf32, #tpu.memory_space<vmem>>, vector<32x1xf32>
    %91 = vector.broadcast %90 : vector<32x1xf32> to vector<32x2xf32>
    %92 = arith.mulf %91, %89 : vector<32x2xf32>
    %cst_27 = arith.constant dense<0.000000e+00> : vector<2xf32>
    %93 = vector.multi_reduction <add>, %92, %cst_27 [0] : vector<32x2xf32> to vector<2xf32>
    %94 = vector.shape_cast %93 : vector<2xf32> to vector<1x2xf32>
    %c0_28 = arith.constant 0 : index
    %c0_29 = arith.constant 0 : index
    %95 = vector.load %arg6[%c0_28, %c0_29] : memref<1x1xf32, #tpu.memory_space<vmem>>, vector<1x1xf32>
    %96 = vector.broadcast %95 : vector<1x1xf32> to vector<1x2xf32>
    %97 = arith.addf %94, %96 : vector<1x2xf32>
    %c0_30 = arith.constant 0 : index
    %c0_31 = arith.constant 0 : index
    %98 = vector.load %arg7[%c0_30, %c0_31] : memref<1x2xf32, #tpu.memory_space<vmem>>, vector<1x2xf32>
    tpu.vector_store %arg7[%c0_30, %c0_31], %97 {strides = array<i32>} : memref<1x2xf32, #tpu.memory_space<vmem>>, vector<1x2xf32>,
    return
  }
}

</mosaic_0001>

<bundles_post_ra>
// kernel: tpu_custom_call.1
= control target key start
LH: loop header
LB: loop body
LE: loop exit
PB: predicated region body
PF: predicated region fallthrough
CT: control target
= control target key end

     0   :  { %s2819_s0 = inlined_call_operand.vmem [shape: f32[4,16], index: 0, kind: input, shape index: {}]   ;;  %s2820_s1 = inlined_call_operand.vmem [shape: f32[128,4], index: 1, kind: input, shape index: {}]   ;;  %s2821_s2 = inlined_call_operand.vmem [shape: f32[128,1], index: 2, kind: input, shape index: {}]   ;;  %s2822_s3 = inlined_call_operand.vmem [shape: f32[128,32], index: 3, kind: input, shape index: {}]   ;;  %s2823_s4 = inlined_call_operand.vmem [shape: f32[128,1], index: 4, kind: input, shape index: {}]   ;;  %s2824_s5 = inlined_call_operand.vmem [shape: f32[32,1], index: 5, kind: input, shape index: {}]   ;;  %s2825_s6 = inlined_call_operand.<no memory space> [shape: f32[1,1], index: 6, kind: input, shape index: {}]   ;;  %s2826_s7 = inlined_call_operand.hbm [shape: f32[1,2], index: 7, kind: output, shape index: {}]  }
   0x1   :  { %v12_v0 = vstv %s2825_s6 }
   0x2   :  { %13 = vst [vmem:[#allocation2] sm:$0x1] %v12_v0 }
   0x3   :  { %v31_v1 = vld [vmem:[%s2819_s0] sm:$0xf]  ;;  %vm193_vm0 = vcmask 1043456   ;;  %vm144_vm1 = vcmask 31744   ;;  %v41_v3 = vld [vmem:[%s2820_s1 + $0x48] sm:$0xff]  ;;  %v51_v5 = vld [vmem:[%s2821_s2 + $0x18] sm:$0xff] }
   0x4   :  { %v32_v2 = vld [vmem:[%s2820_s1] sm:$0xff]  ;;  %1556 = vmatpush.msk.msra.mxu0 %vm193_vm0, %v31_v1  ;;  %1613 = vmatpush.msk.msra.mxu3 %vm193_vm0, %v31_v1  ;;  %v49_v4 = vld [vmem:[%s2821_s2 + $0x8] sm:$0xff]  ;;  %v1781_v6 = vmov 0  }
   0x5   :  { %1557 = vmatmul.msk.f32.vlgmr.msra.gmra.mxu0 %vm144_vm1, %v32_v2  ;;  %1566 = vmatmul.msk.f32.vlgmr.msra.gmra.mxu3 %vm144_vm1, %v41_v3 }
   0x6   :  { %1625 = vset.pattern.permute.xlu1 %v1781_v6  ;;  %1624 = vset.pattern.permute.xlu0 %v1781_v6 }
   0x7   :  { %71 = vperm.xlu1 %1625, %v49_v4   ;;  %81 = vperm.xlu0 %1624, %v51_v5  }
   0x8   :  { %1626 = vset.pattern.permute.xlu2 %v1781_v6 }
   0x9   :  { %14 = vsyncpa [#allocation4], 0  ;;  %v33_v7 = vld [vmem:[%s2820_s1 + $0x8] sm:$0xff]  ;;  %v42_v8 = vld [vmem:[%s2820_s1 + $0x50] sm:$0xff]  ;;  %s1782_s20 = smov 16   ;;  %s1783_s10 = smov 114  }
   0xa   :  { %v48_v9 = vld [vmem:[%s2821_s2] sm:$0xff]  ;;  %v50_v10 = vld [vmem:[%s2821_s2 + $0x10] sm:$0xff]  ;;  %v43_v12 = vld [vmem:[%s2820_s1 + $0x58] sm:$0xff]  ;;  %s1784_s0 = smov 116   ;;  %s1785_s19 = smov 120  }
   0xb   :  { %v34_v11 = vld [vmem:[%s2820_s1 + $0x10] sm:$0xff]  ;;  %v61_v13 = vld [vmem:[%s2821_s2 + $0x68] sm:$0xff]  ;;  %v60_v14 = vld [vmem:[%s2821_s2 + $0x60] sm:$0xff]  ;;  %s1547_s21 = sshll.u32 %s2826_s7, 4  ;;  %s1548_s21 = int_to_ptr.hbm [resolvable:$true] %s1547_s21 }
   0xc   :  { %v63_v15 = vld [vmem:[%s2821_s2 + $0x78] sm:$0xff]  ;;  %v44_v17 = vld [vmem:[%s2820_s1 + $0x60] sm:$0xff]  ;;  %v62_v18 = vld [vmem:[%s2821_s2 + $0x70] sm:$0xff] }
   0xd   :  { %1558 = vmatmul.msk.f32.gmra.mxu0 %vm144_vm1, %v33_v7  ;;  %1567 = vmatmul.msk.f32.gmra.mxu3 %vm144_vm1, %v42_v8  ;;  %v35_v16 = vld [vmem:[%s2820_s1 + $0x18] sm:$0xff]  ;;  %v45_v19 = vld [vmem:[%s2820_s1 + $0x68] sm:$0xff]  ;;  %v46_v20 = vld [vmem:[%s2820_s1 + $0x70] sm:$0xff] }
   0xe   :  { %141 = vperm.xlu2 %1626, %v63_v15   ;;  %v47_v21 = vld [vmem:[%s2820_s1 + $0x78] sm:$0xff]  ;;  %v36_v0 = vld [vmem:[%s2820_s1 + $0x20] sm:$0xff] }
   0xf   :  { %66 = vperm.xlu1 %1625, %v48_v9   ;;  %76 = vperm.xlu0 %1624, %v50_v10  }
  0x15   :  { %1559 = vmatmul.msk.f32.gmra.mxu0 %vm144_vm1, %v34_v11  ;;  %1568 = vmatmul.msk.f32.gmra.mxu3 %vm144_vm1, %v43_v12 }
  0x16   :  { %136 = vperm.xlu2 %1626, %v62_v18  }
  0x17   :  { %131 = vperm.xlu0 %1624, %v61_v13   ;;  %126 = vperm.xlu1 %1625, %v60_v14   ;;  %v37_v14 = vld [vmem:[%s2820_s1 + $0x28] sm:$0xff] }
  0x1d   :  { %1560 = vmatmul.msk.f32.gmra.mxu0 %vm144_vm1, %v35_v16  ;;  %1569 = vmatmul.msk.f32.gmra.mxu3 %vm144_vm1, %v44_v17 }
  0x25   :  { %1570 = vmatmul.msk.f32.gmra.mxu3 %vm144_vm1, %v45_v19  ;;  %1561 = vmatmul.msk.f32.gmra.mxu0 %vm144_vm1, %v36_v0 }
  0x2d   :  { %1571 = vmatmul.msk.f32.gmra.mxu3 %vm144_vm1, %v46_v20  ;;  %1562 = vmatmul.msk.f32.gmra.mxu0 %vm144_vm1, %v37_v14 }
  0x35   :  { %1572 = vmatmul.msk.f32.gmra.mxu3 %vm144_vm1, %v47_v21 }
  0x68   :  { %v142_v53 = vpop.permute.xlu2 %141 }
  0x70   :  { %v137_v6 = vpop.permute.xlu2 %136 }
  0x79   :  { %v82_v23 = vpop.permute.xlu0 %81  ;;  %v72_v25 = vpop.permute.xlu1 %71 }
  0x81   :  { %v77_v30 = vpop.permute.xlu0 %76  ;;  %v67_v32 = vpop.permute.xlu1 %66 }
  0x82   :  { %v214_v22 = vpop.f32.mrf.mxu0 }
  0x83   :  { %v215_v36 = vadd.f32 %v214_v22, %v67_v32  ;;  %v38_v32 = vld [vmem:[%s2820_s1 + $0x30] sm:$0xff] }
  0x84   :  { %1563 = vmatmul.msk.f32.gmra.mxu0 %vm144_vm1, %v38_v32 }
  0x85   :  { %v1573_v39 = vmul.f32 -1.442695, %v215_v36 }
  0x88   :  { %v1901_v24 = vpop.f32.mrf.mxu3 }
  0x89   :  { %v132_v56 = vpop.permute.xlu0 %131 }
  0x8a   :  { %v217_v26 = vpop.f32.mrf.mxu0 }
  0x8b   :  { %v218_v27 = vadd.f32 %v217_v26, %v72_v25 }
  0x8d   :  { %v1574_v28 = vmul.f32 -1.442695, %v218_v27 }
  0x8f   :  { %1627 = vpow2.f32 %v1574_v28  ;;  %v127_v28 = vpop.permute.xlu1 %126 }
  0x90   :  { %v1903_v29 = vpop.f32.mrf.mxu3 }
  0x92   :  { %v220_v31 = vpop.f32.mrf.mxu0 }
  0x93   :  { %v221_v33 = vadd.f32 %v220_v31, %v77_v30 }
  0x95   :  { %v1628_v34 = vpop.eup %1627  ;;  %v1575_v35 = vmul.f32 -1.442695, %v221_v33 }
  0x96   :  { %v299_v37 = vadd.f32 1.0, %v1628_v34 }
  0x97   :  { %1629 = vpow2.f32 %v1575_v35 }
  0x98   :  { %1631 = vrcp.f32 %v299_v37  ;;  %v1905_v38 = vpop.f32.mrf.mxu3  ;;  %vm330_vm2 = vweird.f32 %v299_v37  ;;  %v336_v62 = vand.u32 2147483648, %v299_v37  ;;  %v334_v63 = vand.u32 2147483647, %v299_v37 }
  0x99   :  { %1633 = vpow2.f32 %v1573_v39 }
  0x9a   :  { %v223_v40 = vpop.f32.mrf.mxu0  ;;  %v337_v5 = vor.u32 1.1754944e-38, %v336_v62  ;;  %vm335_vm5 = vcmp.eq.f32.partialorder %v334_v63, 8.507059e+37  ;;  %v55_v62 = vld [vmem:[%s2821_s2 + $0x38] sm:$0xff]  ;;  %v52_v63 = vld [vmem:[%s2821_s2 + $0x20] sm:$0xff] }
  0x9b   :  { %v224_v41 = vadd.f32 %v223_v40, %v82_v23 }
  0x9d   :  { %v1630_v42 = vpop.eup %1629  ;;  %v1576_v43 = vmul.f32 -1.442695, %v224_v41 }
  0x9e   :  { %v1632_v44 = vpop.eup %1631  ;;  %v300_v45 = vadd.f32 1.0, %v1630_v42 }
  0x9f   :  { %v326_v46 = vmul.f32 %v1632_v44, %v299_v37  ;;  %1635 = vpow2.f32 %v1576_v43  ;;  %v1634_v49 = vpop.eup %1633  ;;  %vm331_vm3 = vweird.f32 %v1632_v44 }
  0xa0   :  { %1637 = vrcp.f32 %v300_v45  ;;  %v1907_v47 = vpop.f32.mrf.mxu3  ;;  %v1912_v58 = vadd.f32 1.0, %v1634_v49  ;;  %vm332_vm4 = vmor %vm330_vm2, %vm331_vm3  ;;  %v351_v16 = vand.u32 2147483648, %v300_v45  ;;  %vm345_vm7 = vweird.f32 %v300_v45 }
  0xa1   :  { %v327_v48 = vsub.f32 1.0, %v326_v46  ;;  %v349_v17 = vand.u32 2147483647, %v300_v45  ;;  %v251_v35 = vadd.f32 %v1907_v47, %v127_v28  ;;  %vm498_vm3 = vcmask 1047680  }
  0xa2   :  { %v352_v21 = vor.u32 1.1754944e-38, %v351_v16  ;;  %vm315_vm14 = vweird.f32 %v1912_v58  ;;  %v1980_v0 = vpop.f32.mrf.mxu0 }
  0xa3   :  { %v328_v54 = vmul.f32 %v1632_v44, %v327_v48  ;;  %vm350_vm9 = vcmp.eq.f32.partialorder %v349_v17, 8.507059e+37 }
  0xa5   :  { %v1636_v50 = vpop.eup %1635  ;;  %v329_v61 = vadd.f32 %v1632_v44, %v328_v54 }
  0xa6   :  { %v1638_v51 = vpop.eup %1637  ;;  %v1909_v52 = vadd.f32 1.0, %v1636_v50 }
  0xa7   :  { %v341_v55 = vmul.f32 %v1638_v51, %v300_v45  ;;  %v333_v2 = vsel %vm332_vm4, %v1632_v44, %v329_v61  ;;  %vm346_vm6 = vweird.f32 %v1638_v51  ;;  %v321_v44 = vand.u32 2147483648, %v1912_v58 }
  0xa8   :  { %1639 = vrcp.f32 %v1909_v52  ;;  %v253_v57 = vpop.f32.mrf.mxu3  ;;  %v338_v9 = vsel %vm335_vm5, %v337_v5, %v333_v2  ;;  %vm347_vm8 = vmor %vm345_vm7, %vm346_vm6  ;;  %v366_v33 = vand.u32 2147483648, %v1909_v52  ;;  %vm360_vm11 = vweird.f32 %v1909_v52 }
  0xa9   :  { %v254_v59 = vadd.f32 %v253_v57, %v132_v56  ;;  %v342_v60 = vsub.f32 1.0, %v341_v55  ;;  %v364_v34 = vand.u32 2147483647, %v1909_v52  ;;  %v319_v45 = vand.u32 2147483647, %v1912_v58 }
  0xaa   :  { %v367_v39 = vor.u32 1.1754944e-38, %v366_v33  ;;  %v322_v48 = vor.u32 1.1754944e-38, %v321_v44 }
  0xab   :  { %1641 = vtanh.f32 %v254_v59  ;;  %v343_v3 = vmul.f32 %v1638_v51, %v342_v60  ;;  %vm365_vm13 = vcmp.eq.f32.partialorder %v364_v34, 8.507059e+37  ;;  %vm320_vm2 = vcmp.eq.f32.partialorder %v319_v45, 8.507059e+37  ;;  %v53_v60 = vld [vmem:[%s2821_s2 + $0x28] sm:$0xff] }
  0xac   :  { %1643 = vrcp.f32 %v1912_v58 }
  0xad   :  { %v344_v13 = vadd.f32 %v1638_v51, %v343_v3 }
  0xae   :  { %v1640_v1 = vpop.eup %1639 }
  0xaf   :  { %v356_v4 = vmul.f32 %v1640_v1, %v1909_v52  ;;  %v348_v19 = vsel %vm347_vm8, %v1638_v51, %v344_v13  ;;  %vm361_vm10 = vweird.f32 %v1640_v1  ;;  %v39_v51 = vld [vmem:[%s2820_s1 + $0x38] sm:$0xff] }
  0xb0   :  { %v256_v7 = vpop.f32.mrf.mxu3  ;;  %v353_v25 = vsel %vm350_vm9, %v352_v21, %v348_v19  ;;  %vm362_vm12 = vmor %vm360_vm11, %vm361_vm10  ;;  %1564 = vmatmul.msk.f32.gmra.mxu0 %vm144_vm1, %v39_v51 }
  0xb1   :  { %v1642_v8 = vpop.eup %1641  ;;  %v257_v10 = vadd.f32 %v256_v7, %v137_v6  ;;  %v357_v11 = vsub.f32 1.0, %v356_v4 }
  0xb2   :  { %v1920_v12 = vmul.f32 %v1642_v8, %v338_v9  ;;  %v1644_v15 = vpop.eup %1643 }
  0xb3   :  { %1645 = vtanh.f32 %v257_v10  ;;  %v311_v18 = vmul.f32 %v1644_v15, %v1912_v58  ;;  %v358_v20 = vmul.f32 %v1640_v1, %v357_v11  ;;  %vm316_vm15 = vweird.f32 %v1644_v15  ;;  %v54_v58 = vld [vmem:[%s2821_s2 + $0x30] sm:$0xff] }
  0xb4   :  { %526 = vrot.lane.b32.xlu1 %v1920_v12, %s1782_s20  ;;  %vm317_vm0 = vmor %vm315_vm14, %vm316_vm15 }
  0xb5   :  { %v312_v27 = vsub.f32 1.0, %v311_v18  ;;  %v359_v31 = vadd.f32 %v1640_v1, %v358_v20 }
  0xb7   :  { %v313_v36 = vmul.f32 %v1644_v15, %v312_v27  ;;  %v363_v37 = vsel %vm362_vm12, %v1640_v1, %v359_v31  ;;  %v229_v1 = vpop.f32.mrf.mxu0 }
  0xb8   :  { %v259_v22 = vpop.f32.mrf.mxu3  ;;  %v368_v41 = vsel %vm365_vm13, %v367_v39, %v363_v37 }
  0xb9   :  { %v1646_v23 = vpop.eup %1645  ;;  %v260_v26 = vadd.f32 %v259_v22, %v142_v53  ;;  %v314_v42 = vadd.f32 %v1644_v15, %v313_v36 }
  0xba   :  { %v1929_v30 = vmul.f32 %v1646_v23, %v353_v25 }
  0xbb   :  { %1647 = vtanh.f32 %v260_v26  ;;  %v318_v46 = vsel %vm317_vm0, %v1644_v15, %v314_v42 }
  0xbc   :  { %529 = vrot.lane.b32.xlu0 %v1929_v30, %s1782_s20  ;;  %1649 = vtanh.f32 %v251_v35  ;;  %v323_v49 = vsel %vm320_vm2, %v322_v48, %v318_v46 }
  0xc1   :  { %v1648_v40 = vpop.eup %1647 }
  0xc2   :  { %v1942_v43 = vmul.f32 %v1648_v40, %v368_v41  ;;  %v1650_v47 = vpop.eup %1649 }
  0xc3   :  { %v1948_v50 = vmul.f32 %v1650_v47, %v323_v49 }
  0xc4   :  { %532 = vrot.lane.b32.xlu2 %v1942_v43, %s1782_s20 }
  0xcc   :  { %523 = vrot.lane.b32.xlu2 %v1948_v50, %s1782_s20 }
 0x101   :  { %v232_v4 = vpop.f32.mrf.mxu0 }
 0x11e   :  { %v533_v52 = vpop.permute.xlu2 %532 }
 0x11f   :  { %v534_v53 = vsel %vm498_vm3, %v533_v52, %v1942_v43 }
 0x120   :  { %541 = vrot.lane.b32.xlu0 %v534_v53, %s1782_s20 }
 0x126   :  { %v527_v54 = vpop.permute.xlu1 %526  ;;  %v524_v55 = vpop.permute.xlu2 %523 }
 0x127   :  { %v528_v56 = vsel %vm498_vm3, %v527_v54, %v1920_v12  ;;  %v525_v57 = vsel %vm498_vm3, %v524_v55, %v1948_v50 }
 0x128   :  { %537 = vrot.lane.b32.xlu2 %v528_v56, %s1782_s20  ;;  %535 = vrot.lane.b32.xlu0 %v525_v57, %s1782_s20 }
 0x12d   :  { %v235_v33 = vpop.f32.mrf.mxu0 }
 0x12e   :  { %v530_v59 = vpop.permute.xlu0 %529 }
 0x12f   :  { %v531_v61 = vsel %vm498_vm3, %v530_v59, %v1929_v30 }
 0x130   :  { %539 = vrot.lane.b32.xlu1 %v531_v61, %s1782_s20  ;;  %96 = vperm.xlu2 %1626, %v54_v58  }
 0x131   :  { %91 = vperm.xlu0 %1624, %v53_v60  }
 0x138   :  { %101 = vperm.xlu1 %1625, %v55_v62  }
 0x140   :  { %86 = vperm.xlu1 %1625, %v52_v63  }
 0x182   :  { %v538_v2 = vpop.permute.xlu2 %537 }
 0x183   :  { %v544_v3 = vsel %vm498_vm3, %v538_v2, %v1920_v12 }
 0x184   :  { %554 = vrot.lane.b32.xlu1 %v544_v3, %s1783_s10 }
 0x18a   :  { %v97_v5 = vpop.permute.xlu2 %96 }
 0x18b   :  { %v233_v6 = vadd.f32 %v232_v4, %v97_v5 }
 0x18d   :  { %v1579_v7 = vmul.f32 -1.442695, %v233_v6 }
 0x18f   :  { %1651 = vpow2.f32 %v1579_v7 }
 0x192   :  { %v542_v8 = vpop.permute.xlu0 %541 }
 0x193   :  { %v546_v9 = vsel %vm498_vm3, %v542_v8, %v1942_v43 }
 0x194   :  { %558 = vrot.lane.b32.xlu2 %v546_v9, %s1783_s10 }
 0x195   :  { %v1652_v10 = vpop.eup %1651 }
 0x196   :  { %v304_v11 = vadd.f32 1.0, %v1652_v10 }
 0x198   :  { %1653 = vrcp.f32 %v304_v11  ;;  %v411_v19 = vand.u32 2147483648, %v304_v11  ;;  %v409_v23 = vand.u32 2147483647, %v304_v11  ;;  %vm405_vm5 = vweird.f32 %v304_v11 }
 0x19a   :  { %v536_v13 = vpop.permute.xlu0 %535  ;;  %v412_v28 = vor.u32 1.1754944e-38, %v411_v19  ;;  %vm410_vm7 = vcmp.eq.f32.partialorder %v409_v23, 8.507059e+37 }
 0x19b   :  { %v543_v14 = vsel %vm498_vm3, %v536_v13, %v1948_v50 }
 0x19c   :  { %552 = vrot.lane.b32.xlu2 %v543_v14, %s1783_s10 }
 0x19e   :  { %v1654_v15 = vpop.eup %1653 }
 0x19f   :  { %v401_v16 = vmul.f32 %v1654_v15, %v304_v11  ;;  %vm406_vm4 = vweird.f32 %v1654_v15 }
 0x1a0   :  { %vm407_vm6 = vmor %vm405_vm5, %vm406_vm4 }
 0x1a1   :  { %v402_v17 = vsub.f32 1.0, %v401_v16 }
 0x1a2   :  { %v540_v18 = vpop.permute.xlu1 %539 }
 0x1a3   :  { %v92_v20 = vpop.permute.xlu0 %91  ;;  %v545_v21 = vsel %vm498_vm3, %v540_v18, %v1929_v30  ;;  %v403_v22 = vmul.f32 %v1654_v15, %v402_v17 }
 0x1a4   :  { %v230_v25 = vadd.f32 %v229_v1, %v92_v20  ;;  %556 = vrot.lane.b32.xlu0 %v545_v21, %s1783_s10 }
 0x1a5   :  { %v404_v26 = vadd.f32 %v1654_v15, %v403_v22 }
 0x1a6   :  { %v1578_v27 = vmul.f32 -1.442695, %v230_v25 }
 0x1a7   :  { %v408_v31 = vsel %vm407_vm6, %v1654_v15, %v404_v26 }
 0x1a8   :  { %1655 = vpow2.f32 %v1578_v27  ;;  %v1994_v32 = vsel %vm410_vm7, %v412_v28, %v408_v31 }
 0x1a9   :  { %505 = vrot.lane.b32.xlu1 %v1994_v32, %s1782_s20 }
 0x1aa   :  { %v102_v34 = vpop.permute.xlu1 %101 }
 0x1ab   :  { %v236_v35 = vadd.f32 %v235_v33, %v102_v34 }
 0x1ad   :  { %v1580_v36 = vmul.f32 -1.442695, %v236_v35 }
 0x1ae   :  { %v1656_v37 = vpop.eup %1655 }
 0x1af   :  { %1657 = vpow2.f32 %v1580_v36  ;;  %v303_v39 = vadd.f32 1.0, %v1656_v37 }
 0x1b1   :  { %1659 = vrcp.f32 %v303_v39  ;;  %v396_v61 = vand.u32 2147483648, %v303_v39  ;;  %vm390_vm13 = vweird.f32 %v303_v39  ;;  %v394_v62 = vand.u32 2147483647, %v303_v39 }
 0x1b2   :  { %v87_v56 = vpop.permute.xlu1 %86 }
 0x1b3   :  { %v227_v60 = vadd.f32 %v1980_v0, %v87_v56  ;;  %v397_v2 = vor.u32 1.1754944e-38, %v396_v61  ;;  %vm395_vm15 = vcmp.eq.f32.partialorder %v394_v62, 8.507059e+37  ;;  %v29_v0 = vlaneseq }
 0x1b5   :  { %v1658_v40 = vpop.eup %1657  ;;  %v1577_v1 = vmul.f32 -1.442695, %v227_v60  ;;  %v2007_v9 = vand.u32 127, %v29_v0 }
 0x1b6   :  { %v305_v41 = vadd.f32 1.0, %v1658_v40 }
 0x1b7   :  { %v1660_v42 = vpop.eup %1659  ;;  %vm547_vm0 = vcmp.ge.s32.totalorder %v2007_v9, 2  ;;  %vm648_vm7 = vcmp.ge.s32.totalorder %v2007_v9, 4 }
 0x1b8   :  { %1661 = vrcp.f32 %v305_v41  ;;  %v386_v44 = vmul.f32 %v1660_v42, %v303_v39  ;;  %v426_v49 = vand.u32 2147483648, %v305_v41  ;;  %v424_v52 = vand.u32 2147483647, %v305_v41 }
 0x1b9   :  { %vm420_vm9 = vweird.f32 %v305_v41  ;;  %vm391_vm12 = vweird.f32 %v1660_v42  ;;  %1663 = vpow2.f32 %v1577_v1 }
 0x1ba   :  { %v387_v47 = vsub.f32 1.0, %v386_v44  ;;  %v427_v55 = vor.u32 1.1754944e-38, %v426_v49  ;;  %vm425_vm11 = vcmp.eq.f32.partialorder %v424_v52, 8.507059e+37  ;;  %vm392_vm14 = vmor %vm390_vm13, %vm391_vm12 }
 0x1bc   :  { %v388_v54 = vmul.f32 %v1660_v42, %v387_v47 }
 0x1be   :  { %v1662_v45 = vpop.eup %1661  ;;  %v389_v59 = vadd.f32 %v1660_v42, %v388_v54 }
 0x1bf   :  { %v416_v46 = vmul.f32 %v1662_v45, %v305_v41  ;;  %vm421_vm8 = vweird.f32 %v1662_v45  ;;  %v1664_v4 = vpop.eup %1663 }
 0x1c0   :  { %vm422_vm10 = vmor %vm420_vm9, %vm421_vm8  ;;  %v393_v63 = vsel %vm392_vm14, %v1660_v42, %v389_v59  ;;  %v302_v5 = vadd.f32 1.0, %v1664_v4 }
 0x1c1   :  { %v417_v48 = vsub.f32 1.0, %v416_v46  ;;  %v2003_v3 = vsel %vm395_vm15, %v397_v2, %v393_v63 }
 0x1c2   :  { %1665 = vrcp.f32 %v302_v5  ;;  %v381_v17 = vand.u32 2147483648, %v302_v5  ;;  %vm375_vm4 = vweird.f32 %v302_v5  ;;  %v379_v19 = vand.u32 2147483647, %v302_v5 }
 0x1c3   :  { %v418_v51 = vmul.f32 %v1662_v45, %v417_v48 }
 0x1c4   :  { %v382_v23 = vor.u32 1.1754944e-38, %v381_v17  ;;  %vm380_vm6 = vcmp.eq.f32.partialorder %v379_v19, 8.507059e+37 }
 0x1c5   :  { %v419_v53 = vadd.f32 %v1662_v45, %v418_v51 }
 0x1c7   :  { %v423_v57 = vsel %vm422_vm10, %v1662_v45, %v419_v53 }
 0x1c8   :  { %v1998_v58 = vsel %vm425_vm11, %v427_v55, %v423_v57  ;;  %v1666_v6 = vpop.eup %1665 }
 0x1c9   :  { %508 = vrot.lane.b32.xlu0 %v1998_v58, %s1782_s20  ;;  %v371_v7 = vmul.f32 %v1666_v6, %v302_v5  ;;  %vm376_vm2 = vweird.f32 %v1666_v6 }
 0x1ca   :  { %vm377_vm5 = vmor %vm375_vm4, %vm376_vm2 }
 0x1cb   :  { %v372_v8 = vsub.f32 1.0, %v371_v7 }
 0x1cd   :  { %v373_v13 = vmul.f32 %v1666_v6, %v372_v8 }
 0x1cf   :  { %v374_v16 = vadd.f32 %v1666_v6, %v373_v13 }
 0x1d1   :  { %502 = vrot.lane.b32.xlu0 %v2003_v3, %s1782_s20  ;;  %v378_v21 = vsel %vm377_vm5, %v1666_v6, %v374_v16 }
 0x1d2   :  { %v2021_v25 = vsel %vm380_vm6, %v382_v23, %v378_v21 }
 0x1ee   :  { %v559_v10 = vpop.permute.xlu2 %558 }
 0x1ef   :  { %v567_v11 = vmul.f32 %v559_v10, %v1998_v58 }
 0x1f1   :  { %v571_v14 = vadd.f32 %v567_v11, %v1942_v43 }
 0x1f3   :  { %v2015_v15 = vsel %vm547_vm0, %v571_v14, %v1942_v43 }
 0x1f4   :  { %633 = vrot.lane.b32.xlu2 %v2015_v15, %s1782_s20 }
 0x1f6   :  { %v555_v18 = vpop.permute.xlu1 %554  ;;  %v553_v28 = vpop.permute.xlu2 %552 }
 0x1f7   :  { %v565_v20 = vmul.f32 %v555_v18, %v2003_v3  ;;  %v564_v33 = vmul.f32 %v553_v28, %v2021_v25 }
 0x1f9   :  { %v569_v22 = vadd.f32 %v565_v20, %v1920_v12  ;;  %v568_v36 = vadd.f32 %v564_v33, %v1948_v50 }
 0x1fb   :  { %v2026_v43 = vsel %vm547_vm0, %v569_v22, %v1920_v12  ;;  %v2049_v37 = vsel %vm547_vm0, %v568_v36, %v1948_v50 }
 0x1fc   :  { %499 = vrot.lane.b32.xlu2 %v2021_v25, %s1782_s20  ;;  %627 = vrot.lane.b32.xlu0 %v2026_v43, %s1782_s20 }
 0x216   :  { %v557_v26 = vpop.permute.xlu0 %556 }
 0x217   :  { %v566_v27 = vmul.f32 %v557_v26, %v1994_v32 }
 0x219   :  { %v570_v31 = vadd.f32 %v566_v27, %v1929_v30 }
 0x21b   :  { %v506_v34 = vpop.permute.xlu1 %505  ;;  %v2038_v12 = vsel %vm547_vm0, %v570_v31, %v1929_v30 }
 0x21c   :  { %630 = vrot.lane.b32.xlu1 %v2038_v12, %s1782_s20  ;;  %v507_v35 = vsel %vm498_vm3, %v506_v34, %v1994_v32 }
 0x21d   :  { %515 = vrot.lane.b32.xlu0 %v507_v35, %s1782_s20 }
 0x224   :  { %624 = vrot.lane.b32.xlu1 %v2049_v37, %s1782_s20 }
 0x23b   :  { %v509_v30 = vpop.permute.xlu0 %508 }
 0x23c   :  { %v510_v39 = vsel %vm498_vm3, %v509_v30, %v1998_v58 }
 0x23d   :  { %517 = vrot.lane.b32.xlu2 %v510_v39, %s1782_s20 }
 0x243   :  { %v503_v40 = vpop.permute.xlu0 %502 }
 0x244   :  { %v504_v41 = vsel %vm498_vm3, %v503_v40, %v2003_v3 }
 0x245   :  { %513 = vrot.lane.b32.xlu2 %v504_v41, %s1782_s20 }
 0x24e   :  { %v634_v42 = vpop.permute.xlu2 %633 }
 0x24f   :  { %v635_v50 = vsel %vm498_vm3, %v634_v42, %v2015_v15 }
 0x250   :  { %642 = vrot.lane.b32.xlu1 %v635_v50, %s1782_s20 }
 0x256   :  { %v500_v44 = vpop.permute.xlu2 %499 }
 0x257   :  { %v501_v45 = vsel %vm498_vm3, %v500_v44, %v2021_v25 }
 0x258   :  { %511 = vrot.lane.b32.xlu1 %v501_v45, %s1782_s20 }
 0x26e   :  { %v628_v46 = vpop.permute.xlu0 %627 }
 0x26f   :  { %v629_v47 = vsel %vm498_vm3, %v628_v46, %v2026_v43 }
 0x270   :  { %638 = vrot.lane.b32.xlu2 %v629_v47, %s1782_s20  ;;  %v59_v47 = vld [vmem:[%s2821_s2 + $0x58] sm:$0xff] }
 0x28e   :  { %v631_v48 = vpop.permute.xlu1 %630 }
 0x28f   :  { %v516_v49 = vpop.permute.xlu0 %515  ;;  %v632_v51 = vsel %vm498_vm3, %v631_v48, %v2038_v12  ;;  %v56_v48 = vld [vmem:[%s2821_s2 + $0x40] sm:$0xff] }
 0x290   :  { %640 = vrot.lane.b32.xlu0 %v632_v51, %s1782_s20  ;;  %v521_v52 = vsel %vm498_vm3, %v516_v49, %v1994_v32 }
 0x291   :  { %584 = vrot.lane.b32.xlu2 %v521_v52, %s1783_s10  ;;  %v58_v52 = vld [vmem:[%s2821_s2 + $0x50] sm:$0xff] }
 0x296   :  { %v625_v53 = vpop.permute.xlu1 %624 }
 0x297   :  { %v518_v54 = vpop.permute.xlu2 %517  ;;  %v626_v55 = vsel %vm498_vm3, %v625_v53, %v2049_v37 }
 0x298   :  { %636 = vrot.lane.b32.xlu0 %v626_v55, %s1782_s20  ;;  %v522_v56 = vsel %vm498_vm3, %v518_v54, %v1998_v58 }
 0x299   :  { %586 = vrot.lane.b32.xlu1 %v522_v56, %s1783_s10 }
 0x29f   :  { %v514_v57 = vpop.permute.xlu2 %513 }
 0x2a0   :  { %v520_v59 = vsel %vm498_vm3, %v514_v57, %v2003_v3 }
 0x2a1   :  { %582 = vrot.lane.b32.xlu1 %v520_v59, %s1783_s10 }
 0x2c2   :  { %v643_v60 = vpop.permute.xlu1 %642 }
 0x2c3   :  { %v647_v61 = vsel %vm498_vm3, %v643_v60, %v2015_v15 }
 0x2c4   :  { %659 = vrot.lane.b32.xlu0 %v647_v61, %s1784_s0  ;;  %v57_v61 = vld [vmem:[%s2821_s2 + $0x48] sm:$0xff] }
 0x2ca   :  { %v639_v62 = vpop.permute.xlu2 %638  ;;  %v512_v63 = vpop.permute.xlu1 %511 }
 0x2cb   :  { %v645_v1 = vsel %vm498_vm3, %v639_v62, %v2026_v43  ;;  %v519_v2 = vsel %vm498_vm3, %v512_v63, %v2021_v25 }
 0x2cc   :  { %655 = vrot.lane.b32.xlu1 %v645_v1, %s1784_s0  ;;  %580 = vrot.lane.b32.xlu0 %v519_v2, %s1783_s10 }
 0x2eb   :  { %v585_v4 = vpop.permute.xlu2 %584 }
 0x2ec   :  { %v594_v5 = vmul.f32 %v585_v4, %v1994_v32 }
 0x2ee   :  { %v2096_v6 = vsel %vm547_vm0, %v594_v5, %v1994_v32 }
 0x2ef   :  { %606 = vrot.lane.b32.xlu1 %v2096_v6, %s1782_s20 }
 0x302   :  { %v641_v7 = vpop.permute.xlu0 %640 }
 0x303   :  { %v646_v0 = vsel %vm498_vm3, %v641_v7, %v2038_v12 }
 0x304   :  { %657 = vrot.lane.b32.xlu2 %v646_v0, %s1784_s0 }
 0x30a   :  { %v637_v8 = vpop.permute.xlu0 %636 }
 0x30b   :  { %v587_v10 = vpop.permute.xlu1 %586  ;;  %v644_v11 = vsel %vm498_vm3, %v637_v8, %v2049_v37 }
 0x30c   :  { %v595_v13 = vmul.f32 %v587_v10, %v1998_v58  ;;  %653 = vrot.lane.b32.xlu2 %v644_v11, %s1784_s0  ;;  %v779_v10 = vld [vmem:[%s2823_s4 + $0x8] sm:$0xff]  ;;  %v778_v11 = vld [vmem:[%s2823_s4] sm:$0xff] }
 0x30e   :  { %v2110_v32 = vsel %vm547_vm0, %v595_v13, %v1998_v58  ;;  %v790_v13 = vld [vmem:[%s2823_s4 + $0x60] sm:$0xff] }
 0x30f   :  { %609 = vrot.lane.b32.xlu0 %v2110_v32, %s1782_s20 }
 0x313   :  { %v583_v14 = vpop.permute.xlu1 %582 }
 0x314   :  { %v593_v16 = vmul.f32 %v583_v14, %v2003_v3  ;;  %v781_v14 = vld [vmem:[%s2823_s4 + $0x18] sm:$0xff] }
 0x316   :  { %v2118_v17 = vsel %vm547_vm0, %v593_v16, %v2003_v3  ;;  %v793_v16 = vld [vmem:[%s2823_s4 + $0x78] sm:$0xff] }
 0x317   :  { %603 = vrot.lane.b32.xlu0 %v2118_v17, %s1782_s20 }
 0x336   :  { %v660_v18 = vpop.permute.xlu0 %659 }
 0x337   :  { %v668_v19 = vmul.f32 %v660_v18, %v2110_v32  ;;  %v792_v18 = vld [vmem:[%s2823_s4 + $0x70] sm:$0xff] }
 0x339   :  { %v672_v58 = vadd.f32 %v668_v19, %v2015_v15 }
 0x33b   :  { %v2128_v20 = vsel %vm648_vm7, %v672_v58, %v2015_v15 }
 0x33c   :  { %710 = vrot.lane.b32.xlu2 %v2128_v20, %s1782_s20 }
 0x33e   :  { %v581_v3 = vpop.permute.xlu0 %580  ;;  %v656_v21 = vpop.permute.xlu1 %655 }
 0x33f   :  { %v592_v22 = vmul.f32 %v581_v3, %v2021_v25  ;;  %v666_v23 = vmul.f32 %v656_v21, %v2118_v17 }
 0x341   :  { %v670_v26 = vadd.f32 %v666_v23, %v2026_v43  ;;  %v2138_v27 = vsel %vm547_vm0, %v592_v22, %v2021_v25 }
 0x343   :  { %v2143_v15 = vsel %vm648_vm7, %v670_v26, %v2026_v43  ;;  %v780_v26 = vld [vmem:[%s2823_s4 + $0x10] sm:$0xff] }
 0x344   :  { %600 = vrot.lane.b32.xlu2 %v2138_v27, %s1782_s20  ;;  %704 = vrot.lane.b32.xlu0 %v2143_v15, %s1782_s20 }
 0x35e   :  { %v658_v28 = vpop.permute.xlu2 %657 }
 0x35f   :  { %v667_v31 = vmul.f32 %v658_v28, %v2096_v6 }
 0x361   :  { %v671_v33 = vadd.f32 %v667_v31, %v2038_v12  ;;  %v607_v34 = vpop.permute.xlu1 %606  ;;  %v791_v31 = vld [vmem:[%s2823_s4 + $0x68] sm:$0xff] }
 0x362   :  { %v608_v25 = vsel %vm498_vm3, %v607_v34, %v2096_v6 }
 0x363   :  { %616 = vrot.lane.b32.xlu0 %v608_v25, %s1782_s20  ;;  %v2157_v43 = vsel %vm648_vm7, %v671_v33, %v2038_v12  ;;  %v40_v12 = vld [vmem:[%s2820_s1 + $0x40] sm:$0xff] }
 0x364   :  { %707 = vrot.lane.b32.xlu1 %v2157_v43, %s1782_s20  ;;  %1565 = vmatmul.msk.f32.gmra.mxu0 %vm144_vm1, %v40_v12  ;;  %vm725_vm1 = vcmp.ge.s32.totalorder %v2007_v9, 8 }
 0x366   :  { %v654_v35 = vpop.permute.xlu2 %653 }
 0x367   :  { %v665_v36 = vmul.f32 %v654_v35, %v2138_v27 }
 0x369   :  { %v669_v30 = vadd.f32 %v665_v36, %v2049_v37 }
 0x36b   :  { %v2166_v39 = vsel %vm648_vm7, %v669_v30, %v2049_v37 }
 0x36c   :  { %701 = vrot.lane.b32.xlu1 %v2166_v39, %s1782_s20 }
 0x381   :  { %v610_v40 = vpop.permute.xlu0 %609 }
 0x382   :  { %v611_v41 = vsel %vm498_vm3, %v610_v40, %v2110_v32 }
 0x383   :  { %618 = vrot.lane.b32.xlu2 %v611_v41, %s1782_s20 }
 0x389   :  { %v604_v42 = vpop.permute.xlu0 %603 }
 0x38a   :  { %v605_v37 = vsel %vm498_vm3, %v604_v42, %v2118_v17 }
 0x38b   :  { %614 = vrot.lane.b32.xlu2 %v605_v37, %s1782_s20 }
 0x396   :  { %v711_v50 = vpop.permute.xlu2 %710 }
 0x397   :  { %v712_v44 = vsel %vm498_vm3, %v711_v50, %v2128_v20 }
 0x398   :  { %719 = vrot.lane.b32.xlu1 %v712_v44, %s1782_s20 }
 0x39e   :  { %v601_v45 = vpop.permute.xlu2 %600 }
 0x39f   :  { %v602_v46 = vsel %vm498_vm3, %v601_v45, %v2138_v27 }
 0x3a0   :  { %612 = vrot.lane.b32.xlu1 %v602_v46, %s1782_s20 }
 0x3a8   :  { %121 = vperm.xlu1 %1625, %v59_v47  }
 0x3b0   :  { %106 = vperm.xlu1 %1625, %v56_v48  }
 0x3b6   :  { %v705_v49 = vpop.permute.xlu0 %704 }
 0x3b7   :  { %v706_v51 = vsel %vm498_vm3, %v705_v49, %v2143_v15 }
 0x3b8   :  { %715 = vrot.lane.b32.xlu2 %v706_v51, %s1782_s20 }
 0x3c0   :  { %116 = vperm.xlu2 %1626, %v58_v52  }
 0x3d5   :  { %v617_v63 = vpop.permute.xlu0 %616 }
 0x3d6   :  { %v708_v53 = vpop.permute.xlu1 %707  ;;  %v622_v1 = vsel %vm498_vm3, %v617_v63, %v2096_v6 }
 0x3d7   :  { %v709_v54 = vsel %vm498_vm3, %v708_v53, %v2157_v43 }
 0x3d8   :  { %717 = vrot.lane.b32.xlu0 %v709_v54, %s1782_s20 }
 0x3dd   :  { %v619_v55 = vpop.permute.xlu2 %618 }
 0x3de   :  { %v702_v56 = vpop.permute.xlu1 %701  ;;  %v623_v57 = vsel %vm498_vm3, %v619_v55, %v2110_v32 }
 0x3df   :  { %687 = vrot.lane.b32.xlu2 %v623_v57, %s1784_s0  ;;  %v703_v59 = vsel %vm498_vm3, %v702_v56, %v2166_v39 }
 0x3e0   :  { %713 = vrot.lane.b32.xlu0 %v703_v59, %s1782_s20 }
 0x3e1   :  { %v238_v57 = vpop.f32.mrf.mxu0 }
 0x3e5   :  { %v615_v60 = vpop.permute.xlu2 %614 }
 0x3e6   :  { %v621_v62 = vsel %vm498_vm3, %v615_v60, %v2118_v17 }
 0x3e7   :  { %683 = vrot.lane.b32.xlu2 %v621_v62, %s1784_s0 }
 0x3e8   :  { %111 = vperm.xlu0 %1624, %v57_v61  }
 0x3f0   :  { %685 = vrot.lane.b32.xlu0 %v622_v1, %s1784_s0 }
 0x40a   :  { %v720_v2 = vpop.permute.xlu1 %719 }
 0x40b   :  { %v724_v4 = vsel %vm498_vm3, %v720_v2, %v2128_v20 }
 0x40c   :  { %736 = vrot.lane.b32.xlu1 %v724_v4, %s1785_s19 }
 0x412   :  { %v716_v5 = vpop.permute.xlu2 %715  ;;  %v613_v7 = vpop.permute.xlu1 %612 }
 0x413   :  { %v722_v0 = vsel %vm498_vm3, %v716_v5, %v2143_v15  ;;  %v620_v8 = vsel %vm498_vm3, %v613_v7, %v2138_v27 }
 0x414   :  { %732 = vrot.lane.b32.xlu2 %v722_v0, %s1785_s19  ;;  %681 = vrot.lane.b32.xlu1 %v620_v8, %s1784_s0 }
 0x41a   :  { %v122_v22 = vpop.permute.xlu1 %121  ;;  %v117_v25 = vpop.permute.xlu2 %116 }
 0x41b   :  { %v248_v23 = vadd.f32 %v1905_v38, %v122_v22  ;;  %v245_v54 = vadd.f32 %v1903_v29, %v117_v25 }
 0x41c   :  { %801 = vperm.xlu2 %1626, %v779_v10   ;;  %796 = vperm.xlu1 %1625, %v778_v11  }
 0x41d   :  { %v1584_v28 = vmul.f32 -1.442695, %v248_v23  ;;  %v1583_v56 = vmul.f32 -1.442695, %v245_v54 }
 0x41f   :  { %1667 = vpow2.f32 %v1584_v28 }
 0x422   :  { %v107_v36 = vpop.permute.xlu1 %106 }
 0x423   :  { %v239_v60 = vadd.f32 %v238_v57, %v107_v36 }
 0x424   :  { %856 = vperm.xlu2 %1626, %v790_v13   ;;  %811 = vperm.xlu1 %1625, %v781_v14  }
 0x425   :  { %v1668_v33 = vpop.eup %1667  ;;  %v1581_v61 = vmul.f32 -1.442695, %v239_v60 }
 0x426   :  { %v309_v34 = vadd.f32 1.0, %v1668_v33 }
 0x428   :  { %1669 = vrcp.f32 %v309_v34  ;;  %v486_v47 = vand.u32 2147483648, %v309_v34  ;;  %vm480_vm9 = vweird.f32 %v309_v34  ;;  %v484_v48 = vand.u32 2147483647, %v309_v34 }
 0x42a   :  { %vm485_vm11 = vcmp.eq.f32.partialorder %v484_v48, 8.507059e+37 }
 0x42c   :  { %871 = vperm.xlu2 %1626, %v793_v16   ;;  %866 = vperm.xlu1 %1625, %v792_v18  }
 0x42e   :  { %v1670_v35 = vpop.eup %1669 }
 0x42f   :  { %v476_v38 = vmul.f32 %v1670_v35, %v309_v34  ;;  %vm481_vm8 = vweird.f32 %v1670_v35 }
 0x430   :  { %vm482_vm10 = vmor %vm480_vm9, %vm481_vm8 }
 0x431   :  { %v477_v40 = vsub.f32 1.0, %v476_v38 }
 0x433   :  { %v478_v50 = vmul.f32 %v1670_v35, %v477_v40 }
 0x435   :  { %v479_v46 = vadd.f32 %v1670_v35, %v478_v50 }
 0x437   :  { %v483_v49 = vsel %vm482_vm10, %v1670_v35, %v479_v46 }
 0x439   :  { %v688_v30 = vpop.permute.xlu2 %687 }
 0x43a   :  { %v696_v12 = vmul.f32 %v688_v30, %v2110_v32 }
 0x43c   :  { %v700_v41 = vsel %vm648_vm7, %v696_v12, %v2110_v32  ;;  %v487_v32 = vor.u32 1.1754944e-38, %v486_v47 }
 0x43e   :  { %v488_v52 = vsel %vm485_vm11, %v487_v32, %v483_v49 }
 0x441   :  { %v684_v4 = vpop.permute.xlu2 %683 }
 0x442   :  { %v694_v7 = vmul.f32 %v684_v4, %v2118_v17  ;;  %v771_v4 = vld [vmem:[%s2822_s3 + $0x48] sm:$0xff] }
 0x444   :  { %v698_v13 = vsel %vm648_vm7, %v694_v7, %v2118_v17  ;;  %v773_v7 = vld [vmem:[%s2822_s3 + $0x58] sm:$0xff] }
 0x44a   :  { %v718_v19 = vpop.permute.xlu0 %717 }
 0x44b   :  { %v723_v58 = vsel %vm498_vm3, %v718_v19, %v2157_v43 }
 0x44c   :  { %734 = vrot.lane.b32.xlu0 %v723_v58, %s1785_s19 }
 0x452   :  { %v714_v3 = vpop.permute.xlu0 %713 }
 0x453   :  { %v721_v21 = vsel %vm498_vm3, %v714_v3, %v2166_v39 }
 0x454   :  { %730 = vrot.lane.b32.xlu0 %v721_v21, %s1785_s19 }
 0x45a   :  { %v112_v55 = vpop.permute.xlu0 %111 }
 0x45c   :  { %806 = vperm.xlu0 %1624, %v780_v26  }
 0x462   :  { %v686_v10 = vpop.permute.xlu0 %685 }
 0x463   :  { %v695_v18 = vmul.f32 %v686_v10, %v2096_v6  ;;  %v776_v10 = vld [vmem:[%s2822_s3 + $0x70] sm:$0xff] }
 0x464   :  { %861 = vperm.xlu0 %1624, %v791_v31  }
 0x465   :  { %v699_v22 = vsel %vm648_vm7, %v695_v18, %v2096_v6 }
 0x46e   :  { %v733_v0 = vpop.permute.xlu2 %732 }
 0x46f   :  { %v743_v14 = vmul.f32 %v733_v0, %v698_v13  ;;  %v774_v0 = vld [vmem:[%s2822_s3 + $0x60] sm:$0xff] }
 0x471   :  { %v747_v3 = vadd.f32 %v743_v14, %v2143_v15 }
 0x473   :  { %v751_v33 = vsel %vm725_vm1, %v747_v3, %v2143_v15 }
 0x47e   :  { %v737_v42 = vpop.permute.xlu1 %736 }
 0x47f   :  { %v745_v37 = vmul.f32 %v737_v42, %v700_v41 }
 0x481   :  { %v749_v44 = vadd.f32 %v745_v37, %v2128_v20 }
 0x483   :  { %v753_v45 = vsel %vm725_vm1, %v749_v44, %v2128_v20  ;;  %v242_v20 = vadd.f32 %v1901_v24, %v112_v55 }
 0x484   :  { %1671 = vtanh.f32 %v753_v45 }
 0x485   :  { %v1582_v59 = vmul.f32 -1.442695, %v242_v20  ;;  %1673 = vpow2.f32 %v1583_v56 }
 0x486   :  { %v682_v28 = vpop.permute.xlu1 %681 }
 0x487   :  { %1675 = vpow2.f32 %v1582_v59  ;;  %v693_v35 = vmul.f32 %v682_v28, %v2138_v27 }
 0x488   :  { %1677 = vpow2.f32 %v1581_v61 }
 0x489   :  { %v697_v42 = vsel %vm648_vm7, %v693_v35, %v2138_v27 }
 0x48a   :  { %v1672_v51 = vpop.eup %1671 }
 0x48b   :  { %v761_v53 = vmul.f32 %v1672_v51, %v488_v52  ;;  %v1674_v62 = vpop.eup %1673 }
 0x48c   :  { %v308_v1 = vadd.f32 1.0, %v1674_v62 }
 0x48d   :  { %935 = vmatpush.msra.mxu1 %v761_v53  ;;  %1614 = vmatpush.msra.mxu2 %v761_v53  ;;  %v1676_v63 = vpop.eup %1675 }
 0x48e   :  { %v2267_v2 = vadd.f32 1.0, %v1676_v63  ;;  %1679 = vrcp.f32 %v308_v1  ;;  %v1678_v5 = vpop.eup %1677  ;;  %vm465_vm13 = vweird.f32 %v308_v1  ;;  %v471_v38 = vand.u32 2147483648, %v308_v1  ;;  %v762_v63 = vld [vmem:[%s2822_s3] sm:$0xff]  ;;  %v797_v13 = vpop.permute.xlu1 %796 }
 0x48f   :  { %v2270_v29 = vadd.f32 1.0, %v1678_v5  ;;  %v469_v15 = vand.u32 2147483647, %v308_v1  ;;  %v764_v5 = vld [vmem:[%s2822_s3 + $0x10] sm:$0xff] }
 0x490   :  { %1681 = vrcp.f32 %v2267_v2  ;;  %vm450_vm2 = vweird.f32 %v2267_v2  ;;  %v454_v44 = vand.u32 2147483647, %v2267_v2  ;;  %v472_v46 = vor.u32 1.1754944e-38, %v471_v38 }
 0x491   :  { %1683 = vrcp.f32 %v2270_v29  ;;  %vm470_vm5 = vcmp.eq.f32.partialorder %v469_v15, 8.507059e+37  ;;  %v441_v20 = vand.u32 2147483648, %v2270_v29  ;;  %vm435_vm9 = vweird.f32 %v2270_v29 }
 0x492   :  { %1685 = vtanh.f32 %v751_v33  ;;  %vm455_vm8 = vcmp.eq.f32.partialorder %v454_v44, 8.507059e+37  ;;  %v439_v57 = vand.u32 2147483647, %v2270_v29 }
 0x493   :  { %v442_v59 = vor.u32 1.1754944e-38, %v441_v20 }
 0x494   :  { %v1680_v24 = vpop.eup %1679  ;;  %vm440_vm11 = vcmp.eq.f32.partialorder %v439_v57, 8.507059e+37 }
 0x495   :  { %v461_v11 = vmul.f32 %v1680_v24, %v308_v1  ;;  %vm466_vm12 = vweird.f32 %v1680_v24  ;;  %v770_v1 = vld [vmem:[%s2822_s3 + $0x40] sm:$0xff] }
 0x496   :  { %v1682_v8 = vpop.eup %1681  ;;  %vm2295_vm14 = vmor %vm465_vm13, %vm466_vm12  ;;  %vm874_vm12 = vcmask 261120  }
 0x497   :  { %v446_v16 = vmul.f32 %v1682_v8, %v2267_v2  ;;  %v462_v19 = vsub.f32 1.0, %v461_v11  ;;  %v2279_v58 = vpop.eup %1683  ;;  %vm451_vm15 = vweird.f32 %v1682_v8  ;;  %v777_v11 = vld [vmem:[%s2822_s3 + $0x78] sm:$0xff] }
 0x498   :  { %v431_v17 = vmul.f32 %v2279_v58, %v2270_v29  ;;  %vm452_vm4 = vmor %vm450_vm2, %vm451_vm15  ;;  %v1686_v47 = vpop.eup %1685  ;;  %vm436_vm6 = vweird.f32 %v2279_v58  ;;  %v772_v29 = vld [vmem:[%s2822_s3 + $0x50] sm:$0xff] }
 0x499   :  { %v447_v21 = vsub.f32 1.0, %v446_v16  ;;  %v463_v26 = vmul.f32 %v1680_v24, %v462_v19  ;;  %vm437_vm10 = vmor %vm435_vm9, %vm436_vm6 }
 0x49a   :  { %v432_v30 = vsub.f32 1.0, %v431_v17 }
 0x49b   :  { %v448_v25 = vmul.f32 %v1682_v8, %v447_v21  ;;  %v464_v36 = vadd.f32 %v1680_v24, %v463_v26 }
 0x49c   :  { %v433_v45 = vmul.f32 %v2279_v58, %v432_v30 }
 0x49d   :  { %v449_v40 = vadd.f32 %v1682_v8, %v448_v25  ;;  %v468_v37 = vsel %vm2295_vm14, %v1680_v24, %v464_v36  ;;  %v765_v24 = vld [vmem:[%s2822_s3 + $0x18] sm:$0xff] }
 0x49e   :  { %v473_v32 = vsel %vm470_vm5, %v472_v46, %v468_v37  ;;  %v434_v54 = vadd.f32 %v2279_v58, %v433_v45 }
 0x49f   :  { %v453_v49 = vsel %vm452_vm4, %v1682_v8, %v449_v40  ;;  %v775_v8 = vld [vmem:[%s2822_s3 + $0x68] sm:$0xff] }
 0x4be   :  { %v735_v23 = vpop.permute.xlu0 %734 }
 0x4bf   :  { %v744_v31 = vmul.f32 %v735_v23, %v699_v22 }
 0x4c1   :  { %v748_v34 = vadd.f32 %v744_v31, %v2157_v43 }
 0x4c3   :  { %v752_v6 = vsel %vm725_vm1, %v748_v34, %v2157_v43  ;;  %v456_v43 = vand.u32 2147483648, %v2267_v2  ;;  %v763_v2 = vld [vmem:[%s2822_s3 + $0x8] sm:$0xff] }
 0x4c4   :  { %1687 = vtanh.f32 %v752_v6  ;;  %v812_v6 = vpop.permute.xlu1 %811 }
 0x4c5   :  { %v457_v51 = vor.u32 1.1754944e-38, %v456_v43 }
 0x4c6   :  { %v731_v41 = vpop.permute.xlu0 %730 }
 0x4c7   :  { %v742_v50 = vmul.f32 %v731_v41, %v697_v42  ;;  %v458_v55 = vsel %vm455_vm8, %v457_v51, %v453_v49 }
 0x4c8   :  { %v759_v56 = vmul.f32 %v1686_v47, %v458_v55  ;;  %v766_v55 = vld [vmem:[%s2822_s3 + $0x20] sm:$0xff] }
 0x4c9   :  { %v746_v48 = vadd.f32 %v742_v50, %v2166_v39 }
 0x4ca   :  { %v1688_v27 = vpop.eup %1687 }
 0x4cb   :  { %v750_v52 = vsel %vm725_vm1, %v746_v48, %v2166_v39  ;;  %v760_v53 = vmul.f32 %v1688_v27, %v473_v32  ;;  %v438_v39 = vsel %vm437_vm10, %v2279_v58, %v434_v54  ;;  %v802_v58 = vpop.permute.xlu2 %801 }
 0x4cc   :  { %1689 = vtanh.f32 %v750_v52  ;;  %v443_v61 = vsel %vm440_vm11, %v442_v59, %v438_v39 }
 0x4cd   :  { %936 = vmatpush.msra.mxu1 %v760_v53  ;;  %1615 = vmatpush.msra.mxu2 %v760_v53 }
 0x4ce   :  { %v807_v31 = vpop.permute.xlu0 %806 }
 0x4cf   :  { %937 = vmatpush.msra.mxu1 %v759_v56  ;;  %1616 = vmatpush.msra.mxu2 %v759_v56 }
 0x4d2   :  { %v1690_v60 = vpop.eup %1689 }
 0x4d3   :  { %v758_v62 = vmul.f32 %v1690_v60, %v443_v61  ;;  %v857_v47 = vpop.permute.xlu2 %856 }
 0x4d5   :  { %938 = vmatpush.msra.mxu1 %v758_v62  ;;  %1617 = vmatpush.msra.mxu2 %v758_v62 }
 0x4d6   :  { %1585 = vmatmul.msk.f32.vlgmr.msra.gmra.mxu1 %vm874_vm12, %v762_v63  ;;  %1593 = vmatmul.msk.f32.vlgmr.msra.gmra.mxu2 %vm874_vm12, %v770_v1  ;;  %v862_v59 = vpop.permute.xlu0 %861 }
 0x4de   :  { %1586 = vmatmul.msk.f32.gmra.mxu1 %vm874_vm12, %v763_v2  ;;  %1594 = vmatmul.msk.f32.gmra.mxu2 %vm874_vm12, %v771_v4 }
 0x4e6   :  { %1587 = vmatmul.msk.f32.gmra.mxu1 %vm874_vm12, %v764_v5  ;;  %1595 = vmatmul.msk.f32.gmra.mxu2 %vm874_vm12, %v772_v29  ;;  %v767_v5 = vld [vmem:[%s2822_s3 + $0x28] sm:$0xff] }
 0x4ee   :  { %1588 = vmatmul.msk.f32.gmra.mxu1 %vm874_vm12, %v765_v24  ;;  %1596 = vmatmul.msk.f32.gmra.mxu2 %vm874_vm12, %v773_v7 }
 0x4f6   :  { %1597 = vmatmul.msk.f32.gmra.mxu2 %vm874_vm12, %v774_v0  ;;  %1589 = vmatmul.msk.f32.gmra.mxu1 %vm874_vm12, %v766_v55 }
 0x4fe   :  { %1598 = vmatmul.msk.f32.gmra.mxu2 %vm874_vm12, %v775_v8  ;;  %1590 = vmatmul.msk.f32.gmra.mxu1 %vm874_vm12, %v767_v5 }
 0x506   :  { %1599 = vmatmul.msk.f32.gmra.mxu2 %vm874_vm12, %v776_v10 }
 0x50e   :  { %1600 = vmatmul.msk.f32.gmra.mxu2 %vm874_vm12, %v777_v11 }
 0x553   :  { %v940_v14 = vpop.f32.mrf.mxu1 }
 0x554   :  { %v941_v16 = vadd.f32 %v940_v14, %v797_v13  ;;  %v867_v13 = vpop.permute.xlu1 %866 }
 0x556   :  { %v1601_v18 = vmul.f32 -1.442695, %v941_v16 }
 0x558   :  { %1691 = vpow2.f32 %v1601_v18 }
 0x559   :  { %v2366_v19 = vpop.f32.mrf.mxu2 }
 0x55b   :  { %v943_v3 = vpop.f32.mrf.mxu1 }
 0x55c   :  { %v944_v21 = vadd.f32 %v943_v3, %v802_v58 }
 0x55e   :  { %v1602_v22 = vmul.f32 -1.442695, %v944_v21  ;;  %v1692_v23 = vpop.eup %1691 }
 0x55f   :  { %v1024_v28 = vadd.f32 1.0, %v1692_v23  ;;  %v768_v23 = vld [vmem:[%s2822_s3 + $0x30] sm:$0xff] }
 0x560   :  { %1693 = vpow2.f32 %v1602_v22  ;;  %1591 = vmatmul.msk.f32.gmra.mxu1 %vm874_vm12, %v768_v23 }
 0x561   :  { %v2368_v26 = vpop.f32.mrf.mxu2  ;;  %1695 = vrcp.f32 %v1024_v28  ;;  %v1047_v53 = vand.u32 2147483648, %v1024_v28  ;;  %vm1041_vm14 = vweird.f32 %v1024_v28  ;;  %v1045_v54 = vand.u32 2147483647, %v1024_v28 }
 0x563   :  { %v946_v17 = vpop.f32.mrf.mxu1  ;;  %v1048_v39 = vor.u32 1.1754944e-38, %v1047_v53  ;;  %vm1046_vm2 = vcmp.eq.f32.partialorder %v1045_v54, 8.507059e+37  ;;  %v782_v53 = vld [vmem:[%s2823_s4 + $0x20] sm:$0xff]  ;;  %v785_v54 = vld [vmem:[%s2823_s4 + $0x38] sm:$0xff] }
 0x564   :  { %v947_v33 = vadd.f32 %v946_v17, %v807_v31 }
 0x566   :  { %v1603_v34 = vmul.f32 -1.442695, %v947_v33  ;;  %v1694_v25 = vpop.eup %1693 }
 0x567   :  { %v1025_v36 = vadd.f32 1.0, %v1694_v25  ;;  %v1696_v38 = vpop.eup %1695  ;;  %v872_v25 = vpop.permute.xlu2 %871 }
 0x568   :  { %1697 = vpow2.f32 %v1603_v34  ;;  %v1037_v41 = vmul.f32 %v1696_v38, %v1024_v28  ;;  %vm1042_vm13 = vweird.f32 %v1696_v38 }
 0x569   :  { %v2370_v35 = vpop.f32.mrf.mxu2  ;;  %1699 = vrcp.f32 %v1025_v36  ;;  %vm1043_vm15 = vmor %vm1041_vm14, %vm1042_vm13  ;;  %v1062_v24 = vand.u32 2147483648, %v1025_v36  ;;  %vm1056_vm5 = vweird.f32 %v1025_v36  ;;  %v1060_v7 = vand.u32 2147483647, %v1025_v36 }
 0x56a   :  { %v1038_v43 = vsub.f32 1.0, %v1037_v41 }
 0x56b   :  { %v949_v30 = vpop.f32.mrf.mxu1  ;;  %v1063_v11 = vor.u32 1.1754944e-38, %v1062_v24  ;;  %vm1061_vm8 = vcmp.eq.f32.partialorder %v1060_v7, 8.507059e+37 }
 0x56c   :  { %v950_v12 = vadd.f32 %v949_v30, %v812_v6  ;;  %v1039_v46 = vmul.f32 %v1696_v38, %v1038_v43 }
 0x56e   :  { %v1604_v15 = vmul.f32 -1.442695, %v950_v12  ;;  %v1698_v40 = vpop.eup %1697  ;;  %v1040_v51 = vadd.f32 %v1696_v38, %v1039_v46 }
 0x56f   :  { %v2374_v37 = vadd.f32 1.0, %v1698_v40  ;;  %v1700_v50 = vpop.eup %1699  ;;  %v769_v40 = vld [vmem:[%s2822_s3 + $0x38] sm:$0xff] }
 0x570   :  { %1701 = vpow2.f32 %v1604_v15  ;;  %v1052_v45 = vmul.f32 %v1700_v50, %v1025_v36  ;;  %v1044_v56 = vsel %vm1043_vm15, %v1696_v38, %v1040_v51  ;;  %vm1057_vm4 = vweird.f32 %v1700_v50  ;;  %1592 = vmatmul.msk.f32.gmra.mxu1 %vm874_vm12, %v769_v40 }
 0x571   :  { %v2372_v42 = vpop.f32.mrf.mxu2  ;;  %1703 = vrcp.f32 %v2374_v37  ;;  %v1049_v62 = vsel %vm1046_vm2, %v1048_v39, %v1044_v56  ;;  %vm1058_vm6 = vmor %vm1056_vm5, %vm1057_vm4  ;;  %v1077_v28 = vand.u32 2147483648, %v2374_v37  ;;  %vm1071_vm10 = vweird.f32 %v2374_v37  ;;  %v784_v56 = vld [vmem:[%s2823_s4 + $0x30] sm:$0xff] }
 0x572   :  { %v1053_v32 = vsub.f32 1.0, %v1052_v45  ;;  %v1075_v31 = vand.u32 2147483647, %v2374_v37 }
 0x573   :  { %v1078_v34 = vor.u32 1.1754944e-38, %v1077_v28 }
 0x574   :  { %v1054_v57 = vmul.f32 %v1700_v50, %v1053_v32  ;;  %vm1076_vm13 = vcmp.eq.f32.partialorder %v1075_v31, 8.507059e+37 }
 0x576   :  { %v1702_v44 = vpop.eup %1701  ;;  %v1055_v4 = vadd.f32 %v1700_v50, %v1054_v57 }
 0x577   :  { %v2377_v49 = vadd.f32 1.0, %v1702_v44  ;;  %v2379_v52 = vpop.eup %1703 }
 0x578   :  { %v1067_v20 = vmul.f32 %v2379_v52, %v2374_v37  ;;  %v1059_v8 = vsel %vm1058_vm6, %v1700_v50, %v1055_v4  ;;  %vm1072_vm9 = vweird.f32 %v2379_v52 }
 0x579   :  { %v976_v48 = vpop.f32.mrf.mxu2  ;;  %v1064_v18 = vsel %vm1061_vm8, %v1063_v11, %v1059_v8  ;;  %vm1073_vm11 = vmor %vm1071_vm10, %vm1072_vm9  ;;  %v1092_v41 = vand.u32 2147483648, %v2377_v49  ;;  %vm1086_vm15 = vweird.f32 %v2377_v49  ;;  %v1090_v37 = vand.u32 2147483647, %v2377_v49 }
 0x57a   :  { %v977_v27 = vadd.f32 %v976_v48, %v857_v47  ;;  %v1068_v1 = vsub.f32 1.0, %v1067_v20 }
 0x57b   :  { %v1093_v50 = vor.u32 1.1754944e-38, %v1092_v41  ;;  %vm1091_vm4 = vcmp.eq.f32.partialorder %v1090_v37, 8.507059e+37 }
 0x57c   :  { %1705 = vtanh.f32 %v977_v27  ;;  %v1069_v10 = vmul.f32 %v2379_v52, %v1068_v1 }
 0x57d   :  { %1707 = vrcp.f32 %v2377_v49 }
 0x57e   :  { %v1070_v22 = vadd.f32 %v2379_v52, %v1069_v10 }
 0x580   :  { %v1074_v17 = vsel %vm1073_vm11, %v2379_v52, %v1070_v22 }
 0x581   :  { %v979_v60 = vpop.f32.mrf.mxu2  ;;  %v1079_v30 = vsel %vm1076_vm13, %v1078_v34, %v1074_v17 }
 0x582   :  { %v1706_v61 = vpop.eup %1705  ;;  %v980_v63 = vadd.f32 %v979_v60, %v862_v59  ;;  %v952_v59 = vpop.f32.mrf.mxu1 }
 0x583   :  { %v2388_v2 = vmul.f32 %v1706_v61, %v1049_v62  ;;  %v1708_v29 = vpop.eup %1707 }
 0x584   :  { %1709 = vtanh.f32 %v980_v63  ;;  %v1082_v0 = vmul.f32 %v1708_v29, %v2377_v49  ;;  %vm1087_vm14 = vweird.f32 %v1708_v29  ;;  %v783_v49 = vld [vmem:[%s2823_s4 + $0x28] sm:$0xff] }
 0x585   :  { %1248 = vrot.lane.b32.xlu0 %v2388_v2, %s1782_s20  ;;  %vm1088_vm2 = vmor %vm1086_vm15, %vm1087_vm14 }
 0x586   :  { %v1083_v3 = vsub.f32 1.0, %v1082_v0 }
 0x588   :  { %v1084_v33 = vmul.f32 %v1708_v29, %v1083_v3 }
 0x589   :  { %v982_v14 = vpop.f32.mrf.mxu2 }
 0x58a   :  { %v1710_v16 = vpop.eup %1709  ;;  %v983_v58 = vadd.f32 %v982_v14, %v867_v13  ;;  %v1085_v15 = vadd.f32 %v1708_v29, %v1084_v33  ;;  %v955_v4 = vpop.f32.mrf.mxu1 }
 0x58b   :  { %v2398_v21 = vmul.f32 %v1710_v16, %v1064_v18 }
 0x58c   :  { %1711 = vtanh.f32 %v983_v58  ;;  %v1089_v43 = vsel %vm1088_vm2, %v1708_v29, %v1085_v15 }
 0x58d   :  { %1251 = vrot.lane.b32.xlu1 %v2398_v21, %s1782_s20  ;;  %v1094_v45 = vsel %vm1091_vm4, %v1093_v50, %v1089_v43 }
 0x591   :  { %v985_v36 = vpop.f32.mrf.mxu2 }
 0x592   :  { %v1712_v6 = vpop.eup %1711  ;;  %v986_v38 = vadd.f32 %v985_v36, %v872_v25 }
 0x593   :  { %v2412_v12 = vmul.f32 %v1712_v6, %v1079_v30 }
 0x594   :  { %1713 = vtanh.f32 %v986_v38 }
 0x595   :  { %1254 = vrot.lane.b32.xlu2 %v2412_v12, %s1782_s20 }
 0x59a   :  { %v1714_v44 = vpop.eup %1713 }
 0x59b   :  { %v2423_v46 = vmul.f32 %v1714_v44, %v1094_v45 }
 0x59d   :  { %1257 = vrot.lane.b32.xlu0 %v2423_v46, %s1782_s20 }
 0x5dd   :  { %v958_v11 = vpop.f32.mrf.mxu1 }
 0x5ed   :  { %v961_v22 = vpop.f32.mrf.mxu1 }
 0x5ef   :  { %v1255_v47 = vpop.permute.xlu2 %1254 }
 0x5f0   :  { %v1256_v48 = vsel %vm498_vm3, %v1255_v47, %v2412_v12 }
 0x5f1   :  { %1264 = vrot.lane.b32.xlu0 %v1256_v48, %s1782_s20 }
 0x5f7   :  { %v1249_v27 = vpop.permute.xlu0 %1248 }
 0x5f8   :  { %v1250_v32 = vsel %vm498_vm3, %v1249_v27, %v2388_v2 }
 0x5f9   :  { %1260 = vrot.lane.b32.xlu1 %v1250_v32, %s1782_s20  ;;  %821 = vperm.xlu0 %1624, %v783_v49  }
 0x5ff   :  { %v1252_v51 = vpop.permute.xlu1 %1251 }
 0x600   :  { %v1253_v52 = vsel %vm498_vm3, %v1252_v51, %v2398_v21 }
 0x601   :  { %1262 = vrot.lane.b32.xlu2 %v1253_v52, %s1782_s20 }
 0x609   :  { %816 = vperm.xlu2 %1626, %v782_v53  }
 0x60f   :  { %v1258_v55 = vpop.permute.xlu0 %1257 }
 0x610   :  { %v1259_v20 = vsel %vm498_vm3, %v1258_v55, %v2423_v46 }
 0x611   :  { %1266 = vrot.lane.b32.xlu1 %v1259_v20, %s1782_s20  ;;  %831 = vperm.xlu2 %1626, %v785_v54  }
 0x619   :  { %826 = vperm.xlu1 %1625, %v784_v56  }
 0x65b   :  { %v1263_v57 = vpop.permute.xlu2 %1262 }
 0x65c   :  { %v1269_v39 = vsel %vm498_vm3, %v1263_v57, %v2398_v21 }
 0x65d   :  { %1278 = vrot.lane.b32.xlu1 %v1269_v39, %s1783_s10 }
 0x663   :  { %v1265_v60 = vpop.permute.xlu0 %1264  ;;  %v817_v61 = vpop.permute.xlu2 %816 }
 0x664   :  { %v953_v62 = vadd.f32 %v952_v59, %v817_v61  ;;  %v1270_v63 = vsel %vm498_vm3, %v1265_v60, %v2412_v12 }
 0x665   :  { %1280 = vrot.lane.b32.xlu2 %v1270_v63, %s1783_s10 }
 0x666   :  { %v1605_v1 = vmul.f32 -1.442695, %v953_v62 }
 0x668   :  { %1715 = vpow2.f32 %v1605_v1 }
 0x66b   :  { %v822_v5 = vpop.permute.xlu0 %821  ;;  %v1261_v24 = vpop.permute.xlu1 %1260 }
 0x66c   :  { %v956_v29 = vadd.f32 %v955_v4, %v822_v5  ;;  %v1268_v7 = vsel %vm498_vm3, %v1261_v24, %v2388_v2  ;;  %v832_v23 = vpop.permute.xlu2 %831 }
 0x66d   :  { %1276 = vrot.lane.b32.xlu0 %v1268_v7, %s1783_s10  ;;  %v962_v34 = vadd.f32 %v961_v22, %v832_v23 }
 0x66e   :  { %v1716_v0 = vpop.eup %1715  ;;  %v1606_v8 = vmul.f32 -1.442695, %v956_v29 }
 0x66f   :  { %v1028_v10 = vadd.f32 1.0, %v1716_v0  ;;  %v1608_v15 = vmul.f32 -1.442695, %v962_v34 }
 0x670   :  { %1717 = vpow2.f32 %v1606_v8 }
 0x671   :  { %1719 = vrcp.f32 %v1028_v10  ;;  %v1107_v3 = vand.u32 2147483648, %v1028_v10  ;;  %v1105_v31 = vand.u32 2147483647, %v1028_v10  ;;  %vm1101_vm5 = vweird.f32 %v1028_v10 }
 0x673   :  { %v1108_v25 = vor.u32 1.1754944e-38, %v1107_v3  ;;  %vm1106_vm8 = vcmp.eq.f32.partialorder %v1105_v31, 8.507059e+37 }
 0x676   :  { %v1718_v13 = vpop.eup %1717 }
 0x677   :  { %v1720_v14 = vpop.eup %1719  ;;  %v1029_v16 = vadd.f32 1.0, %v1718_v13 }
 0x678   :  { %v1097_v18 = vmul.f32 %v1720_v14, %v1028_v10  ;;  %vm1102_vm12 = vweird.f32 %v1720_v14 }
 0x679   :  { %1721 = vrcp.f32 %v1029_v16  ;;  %vm1103_vm6 = vmor %vm1101_vm5, %vm1102_vm12  ;;  %v1122_v41 = vand.u32 2147483648, %v1029_v16  ;;  %v1120_v50 = vand.u32 2147483647, %v1029_v16  ;;  %vm1116_vm10 = vweird.f32 %v1029_v16 }
 0x67a   :  { %v1098_v58 = vsub.f32 1.0, %v1097_v18  ;;  %1723 = vpow2.f32 %v1608_v15 }
 0x67b   :  { %v1123_v45 = vor.u32 1.1754944e-38, %v1122_v41  ;;  %vm1121_vm13 = vcmp.eq.f32.partialorder %v1120_v50, 8.507059e+37 }
 0x67c   :  { %v1099_v28 = vmul.f32 %v1720_v14, %v1098_v58 }
 0x67e   :  { %v1100_v17 = vadd.f32 %v1720_v14, %v1099_v28 }
 0x67f   :  { %v1722_v33 = vpop.eup %1721 }
 0x680   :  { %v1112_v36 = vmul.f32 %v1722_v33, %v1029_v16  ;;  %v1104_v6 = vsel %vm1103_vm6, %v1720_v14, %v1100_v17  ;;  %vm1117_vm9 = vweird.f32 %v1722_v33  ;;  %v1724_v32 = vpop.eup %1723 }
 0x681   :  { %v2460_v30 = vsel %vm1106_vm8, %v1108_v25, %v1104_v6  ;;  %vm1118_vm11 = vmor %vm1116_vm10, %vm1117_vm9  ;;  %v1031_v52 = vadd.f32 1.0, %v1724_v32 }
 0x682   :  { %v1113_v38 = vsub.f32 1.0, %v1112_v36  ;;  %1224 = vrot.lane.b32.xlu1 %v2460_v30, %s1782_s20 }
 0x683   :  { %v1267_v40 = vpop.permute.xlu1 %1266  ;;  %v1152_v7 = vand.u32 2147483648, %v1031_v52  ;;  %vm1146_vm5 = vweird.f32 %v1031_v52  ;;  %v1150_v0 = vand.u32 2147483647, %v1031_v52 }
 0x684   :  { %v1271_v37 = vsel %vm498_vm3, %v1267_v40, %v2423_v46  ;;  %v1114_v43 = vmul.f32 %v1722_v33, %v1113_v38 }
 0x685   :  { %1282 = vrot.lane.b32.xlu0 %v1271_v37, %s1783_s10  ;;  %v1153_v10 = vor.u32 1.1754944e-38, %v1152_v7  ;;  %vm1151_vm8 = vcmp.eq.f32.partialorder %v1150_v0, 8.507059e+37 }
 0x686   :  { %v1115_v44 = vadd.f32 %v1722_v33, %v1114_v43 }
 0x688   :  { %v1119_v47 = vsel %vm1118_vm11, %v1722_v33, %v1115_v44 }
 0x689   :  { %v2467_v48 = vsel %vm1121_vm13, %v1123_v45, %v1119_v47 }
 0x68a   :  { %1227 = vrot.lane.b32.xlu2 %v2467_v48, %s1782_s20 }
 0x68b   :  { %v827_v49 = vpop.permute.xlu1 %826 }
 0x68c   :  { %v959_v27 = vadd.f32 %v958_v11, %v827_v49 }
 0x68e   :  { %v1607_v51 = vmul.f32 -1.442695, %v959_v27 }
 0x690   :  { %1725 = vpow2.f32 %v1607_v51 }
 0x691   :  { %1727 = vrcp.f32 %v1031_v52 }
 0x696   :  { %v1726_v53 = vpop.eup %1725 }
 0x697   :  { %v1030_v54 = vadd.f32 1.0, %v1726_v53  ;;  %v1728_v55 = vpop.eup %1727 }
 0x698   :  { %v1142_v20 = vmul.f32 %v1728_v55, %v1031_v52  ;;  %vm1147_vm12 = vweird.f32 %v1728_v55 }
 0x699   :  { %1729 = vrcp.f32 %v1030_v54  ;;  %v1137_v60 = vand.u32 2147483648, %v1030_v54  ;;  %v1135_v62 = vand.u32 2147483647, %v1030_v54  ;;  %vm1131_vm15 = vweird.f32 %v1030_v54  ;;  %vm1148_vm6 = vmor %vm1146_vm5, %vm1147_vm12 }
 0x69a   :  { %v1143_v39 = vsub.f32 1.0, %v1142_v20 }
 0x69b   :  { %v1138_v4 = vor.u32 1.1754944e-38, %v1137_v60  ;;  %vm1136_vm4 = vcmp.eq.f32.partialorder %v1135_v62, 8.507059e+37 }
 0x69c   :  { %v1144_v1 = vmul.f32 %v1728_v55, %v1143_v39 }
 0x69e   :  { %v1145_v24 = vadd.f32 %v1728_v55, %v1144_v1 }
 0x69f   :  { %v1730_v56 = vpop.eup %1729 }
 0x6a0   :  { %v1127_v57 = vmul.f32 %v1730_v56, %v1030_v54  ;;  %vm1132_vm14 = vweird.f32 %v1730_v56  ;;  %v1149_v8 = vsel %vm1148_vm6, %v1728_v55, %v1145_v24 }
 0x6a1   :  { %vm1133_vm2 = vmor %vm1131_vm15, %vm1132_vm14  ;;  %v2475_v11 = vsel %vm1151_vm8, %v1153_v10, %v1149_v8 }
 0x6a2   :  { %v1128_v59 = vsub.f32 1.0, %v1127_v57 }
 0x6a4   :  { %v1129_v61 = vmul.f32 %v1730_v56, %v1128_v59 }
 0x6a6   :  { %v1130_v63 = vadd.f32 %v1730_v56, %v1129_v61 }
 0x6a8   :  { %v1134_v5 = vsel %vm1133_vm2, %v1730_v56, %v1130_v63 }
 0x6a9   :  { %v2471_v29 = vsel %vm1136_vm4, %v1138_v4, %v1134_v5 }
 0x6aa   :  { %1230 = vrot.lane.b32.xlu0 %v2471_v29, %s1782_s20 }
 0x6b2   :  { %1233 = vrot.lane.b32.xlu0 %v2475_v11, %s1782_s20 }
 0x6bf   :  { %v1281_v22 = vpop.permute.xlu2 %1280 }
 0x6c0   :  { %v1290_v28 = vmul.f32 %v1281_v22, %v2471_v29 }
 0x6cf   :  { %v1279_v13 = vpop.permute.xlu1 %1278 }
 0x6d0   :  { %v1289_v14 = vmul.f32 %v1279_v13, %v2467_v48 }
 0x6d2   :  { %v1293_v16 = vadd.f32 %v1289_v14, %v2398_v21 }
 0x6d4   :  { %v2484_v18 = vsel %vm547_vm0, %v1293_v16, %v2398_v21  ;;  %v1294_v21 = vadd.f32 %v1290_v28, %v2412_v12 }
 0x6d5   :  { %1351 = vrot.lane.b32.xlu2 %v2484_v18, %s1782_s20 }
 0x6d6   :  { %v2502_v17 = vsel %vm547_vm0, %v1294_v21, %v2412_v12 }
 0x6df   :  { %v1277_v58 = vpop.permute.xlu0 %1276 }
 0x6e0   :  { %v1288_v3 = vmul.f32 %v1277_v58, %v2460_v30 }
 0x6e2   :  { %v1292_v23 = vadd.f32 %v1288_v3, %v2388_v2 }
 0x6e4   :  { %v2494_v31 = vsel %vm547_vm0, %v1292_v23, %v2388_v2  ;;  %v1228_v33 = vpop.permute.xlu2 %1227 }
 0x6e5   :  { %1348 = vrot.lane.b32.xlu1 %v2494_v31, %s1782_s20  ;;  %v1229_v25 = vsel %vm498_vm3, %v1228_v33, %v2467_v48 }
 0x6ed   :  { %1354 = vrot.lane.b32.xlu1 %v2502_v17, %s1782_s20 }
 0x6f4   :  { %v1225_v34 = vpop.permute.xlu1 %1224 }
 0x6f5   :  { %v1226_v2 = vsel %vm498_vm3, %v1225_v34, %v2460_v30  ;;  %1238 = vrot.lane.b32.xlu1 %v1229_v25, %s1782_s20 }
 0x6f6   :  { %1236 = vrot.lane.b32.xlu0 %v1226_v2, %s1782_s20 }
 0x6f7   :  { %v1283_v36 = vpop.permute.xlu0 %1282 }
 0x6f8   :  { %v1291_v6 = vmul.f32 %v1283_v36, %v2475_v11 }
 0x6fa   :  { %v1295_v12 = vadd.f32 %v1291_v6, %v2423_v46 }
 0x6fc   :  { %v2517_v38 = vsel %vm547_vm0, %v1295_v12, %v2423_v46 }
 0x6fd   :  { %1357 = vrot.lane.b32.xlu2 %v2517_v38, %s1782_s20 }
 0x71c   :  { %v1231_v15 = vpop.permute.xlu0 %1230 }
 0x71d   :  { %v1232_v40 = vsel %vm498_vm3, %v1231_v15, %v2471_v29 }
 0x71e   :  { %1240 = vrot.lane.b32.xlu2 %v1232_v40, %s1782_s20 }
 0x724   :  { %v1234_v41 = vpop.permute.xlu0 %1233 }
 0x725   :  { %v1235_v37 = vsel %vm498_vm3, %v1234_v41, %v2475_v11 }
 0x726   :  { %1242 = vrot.lane.b32.xlu2 %v1235_v37, %s1782_s20 }
 0x72f   :  { %v1352_v43 = vpop.permute.xlu2 %1351 }
 0x730   :  { %v1353_v46 = vsel %vm498_vm3, %v1352_v43, %v2484_v18 }
 0x731   :  { %1362 = vrot.lane.b32.xlu1 %v1353_v46, %s1782_s20 }
 0x757   :  { %v1358_v50 = vpop.permute.xlu2 %1357  ;;  %v1349_v44 = vpop.permute.xlu1 %1348 }
 0x758   :  { %v1359_v45 = vsel %vm498_vm3, %v1358_v50, %v2517_v38  ;;  %v1350_v47 = vsel %vm498_vm3, %v1349_v44, %v2494_v31 }
 0x759   :  { %1366 = vrot.lane.b32.xlu1 %v1359_v45, %s1782_s20  ;;  %1360 = vrot.lane.b32.xlu0 %v1350_v47, %s1782_s20  ;;  %v789_v45 = vld [vmem:[%s2823_s4 + $0x58] sm:$0xff] }
 0x75f   :  { %v1355_v49 = vpop.permute.xlu1 %1354 }
 0x760   :  { %v1356_v27 = vsel %vm498_vm3, %v1355_v49, %v2502_v17 }
 0x761   :  { %1364 = vrot.lane.b32.xlu0 %v1356_v27, %s1782_s20 }
 0x767   :  { %v1239_v32 = vpop.permute.xlu1 %1238 }
 0x768   :  { %v1237_v51 = vpop.permute.xlu0 %1236  ;;  %v1245_v52 = vsel %vm498_vm3, %v1239_v32, %v2467_v48 }
 0x769   :  { %v1244_v53 = vsel %vm498_vm3, %v1237_v51, %v2460_v30  ;;  %1306 = vrot.lane.b32.xlu0 %v1245_v52, %s1783_s10  ;;  %v788_v51 = vld [vmem:[%s2823_s4 + $0x50] sm:$0xff] }
 0x76a   :  { %1304 = vrot.lane.b32.xlu2 %v1244_v53, %s1783_s10 }
 0x778   :  { %v1241_v54 = vpop.permute.xlu2 %1240 }
 0x779   :  { %v1246_v55 = vsel %vm498_vm3, %v1241_v54, %v2471_v29  ;;  %v787_v54 = vld [vmem:[%s2823_s4 + $0x48] sm:$0xff] }
 0x77a   :  { %1308 = vrot.lane.b32.xlu1 %v1246_v55, %s1783_s10 }
 0x780   :  { %v1243_v20 = vpop.permute.xlu2 %1242 }
 0x781   :  { %v1247_v56 = vsel %vm498_vm3, %v1243_v20, %v2475_v11 }
 0x782   :  { %1310 = vrot.lane.b32.xlu1 %v1247_v56, %s1783_s10 }
 0x7a3   :  { %v1363_v57 = vpop.permute.xlu1 %1362 }
 0x7a4   :  { %v1369_v39 = vsel %vm498_vm3, %v1363_v57, %v2484_v18 }
 0x7a5   :  { %1378 = vrot.lane.b32.xlu0 %v1369_v39, %s1784_s0 }
 0x7c4   :  { %v1305_v59 = vpop.permute.xlu2 %1304 }
 0x7c5   :  { %v1316_v60 = vmul.f32 %v1305_v59, %v2460_v30 }
 0x7c7   :  { %v2558_v61 = vsel %vm547_vm0, %v1316_v60, %v2460_v30 }
 0x7c8   :  { %1324 = vrot.lane.b32.xlu1 %v2558_v61, %s1782_s20 }
 0x7cb   :  { %v1367_v62 = vpop.permute.xlu1 %1366  ;;  %v1361_v63 = vpop.permute.xlu0 %1360 }
 0x7cc   :  { %v1371_v1 = vsel %vm498_vm3, %v1367_v62, %v2517_v38  ;;  %v1368_v4 = vsel %vm498_vm3, %v1361_v63, %v2494_v31  ;;  %v1484_v63 = vld [vmem:[%s2824_s5] sm:$0xff] }
 0x7cd   :  { %1382 = vrot.lane.b32.xlu0 %v1371_v1, %s1784_s0  ;;  %1376 = vrot.lane.b32.xlu2 %v1368_v4, %s1784_s0  ;;  %v1487_v1 = vld [vmem:[%s2824_s5 + $0x18] sm:$0xff] }
 0x7d3   :  { %v1365_v5 = vpop.permute.xlu0 %1364 }
 0x7d4   :  { %v1370_v30 = vsel %vm498_vm3, %v1365_v5, %v2502_v17 }
 0x7d5   :  { %1380 = vrot.lane.b32.xlu2 %v1370_v30, %s1784_s0 }
 0x7db   :  { %v1307_v24 = vpop.permute.xlu0 %1306 }
 0x7dc   :  { %v1317_v7 = vmul.f32 %v1307_v24, %v2467_v48 }
 0x7de   :  { %v2575_v0 = vsel %vm547_vm0, %v1317_v7, %v2467_v48 }
 0x7df   :  { %1327 = vrot.lane.b32.xlu2 %v2575_v0, %s1782_s20 }
 0x7ec   :  { %v1309_v8 = vpop.permute.xlu1 %1308 }
 0x7ed   :  { %v1318_v10 = vmul.f32 %v1309_v8, %v2471_v29 }
 0x7ef   :  { %v2583_v13 = vsel %vm547_vm0, %v1318_v10, %v2471_v29  ;;  %v1486_v10 = vld [vmem:[%s2824_s5 + $0x10] sm:$0xff] }
 0x7f0   :  { %1330 = vrot.lane.b32.xlu0 %v2583_v13, %s1782_s20 }
 0x7f4   :  { %v1311_v14 = vpop.permute.xlu1 %1310 }
 0x7f5   :  { %v1319_v16 = vmul.f32 %v1311_v14, %v2475_v11 }
 0x7f7   :  { %v2591_v48 = vsel %vm547_vm0, %v1319_v16, %v2475_v11 }
 0x7f8   :  { %1333 = vrot.lane.b32.xlu0 %v2591_v48, %s1782_s20 }
 0x817   :  { %v1379_v58 = vpop.permute.xlu0 %1378 }
 0x818   :  { %v1389_v3 = vmul.f32 %v1379_v58, %v2575_v0  ;;  %v1485_v58 = vld [vmem:[%s2824_s5 + $0x8] sm:$0xff]  ;;  %s1786_s5 = smov [#allocation3]  }
 0x81a   :  { %v1393_v29 = vadd.f32 %v1389_v3, %v2484_v18  ;;  %v1526_v3 = vld [vmem:[#allocation2] sm:$0x1] }
 0x81c   :  { %v2600_v22 = vsel %vm648_vm7, %v1393_v29, %v2484_v18 }
 0x81d   :  { %1427 = vrot.lane.b32.xlu2 %v2600_v22, %s1782_s20 }
 0x827   :  { %v1377_v23 = vpop.permute.xlu2 %1376 }
 0x828   :  { %v1388_v11 = vmul.f32 %v1377_v23, %v2558_v61 }
 0x82a   :  { %v1392_v28 = vadd.f32 %v1388_v11, %v2494_v31 }
 0x82c   :  { %v2609_v21 = vsel %vm648_vm7, %v1392_v28, %v2494_v31 }
 0x82d   :  { %1424 = vrot.lane.b32.xlu1 %v2609_v21, %s1782_s20 }
 0x82f   :  { %v1381_v33 = vpop.permute.xlu2 %1380 }
 0x830   :  { %v1390_v18 = vmul.f32 %v1381_v33, %v2583_v13 }
 0x832   :  { %v1394_v34 = vadd.f32 %v1390_v18, %v2502_v17 }
 0x834   :  { %v2618_v25 = vsel %vm648_vm7, %v1394_v34, %v2502_v17 }
 0x835   :  { %1430 = vrot.lane.b32.xlu1 %v2618_v25, %s1782_s20 }
 0x839   :  { %v1328_v2 = vpop.permute.xlu2 %1327 }
 0x83a   :  { %v1325_v36 = vpop.permute.xlu1 %1324  ;;  %v1329_v6 = vsel %vm498_vm3, %v1328_v2, %v2575_v0 }
 0x83b   :  { %v1326_v31 = vsel %vm498_vm3, %v1325_v36, %v2558_v61 }
 0x83c   :  { %1336 = vrot.lane.b32.xlu0 %v1326_v31, %s1782_s20 }
 0x83d   :  { %1338 = vrot.lane.b32.xlu1 %v1329_v6, %s1782_s20 }
 0x83f   :  { %v1383_v12 = vpop.permute.xlu0 %1382 }
 0x840   :  { %v1391_v15 = vmul.f32 %v1383_v12, %v2591_v48 }
 0x842   :  { %v1395_v17 = vadd.f32 %v1391_v15, %v2517_v38 }
 0x844   :  { %v2633_v40 = vsel %vm648_vm7, %v1395_v17, %v2517_v38  ;;  %v786_v38 = vld [vmem:[%s2823_s4 + $0x40] sm:$0xff] }
 0x845   :  { %1433 = vrot.lane.b32.xlu2 %v2633_v40, %s1782_s20 }
 0x862   :  { %v1331_v41 = vpop.permute.xlu0 %1330 }
 0x863   :  { %v1332_v37 = vsel %vm498_vm3, %v1331_v41, %v2583_v13 }
 0x864   :  { %1340 = vrot.lane.b32.xlu2 %v1332_v37, %s1782_s20 }
 0x86a   :  { %v1334_v43 = vpop.permute.xlu0 %1333 }
 0x86b   :  { %v1335_v46 = vsel %vm498_vm3, %v1334_v43, %v2591_v48 }
 0x86c   :  { %1342 = vrot.lane.b32.xlu2 %v1335_v46, %s1782_s20 }
 0x874   :  { %836 = vperm.xlu2 %1626, %v786_v38  }
 0x877   :  { %v1428_v50 = vpop.permute.xlu2 %1427 }
 0x878   :  { %v1429_v44 = vsel %vm498_vm3, %v1428_v50, %v2600_v22 }
 0x879   :  { %1438 = vrot.lane.b32.xlu1 %v1429_v44, %s1782_s20 }
 0x87c   :  { %851 = vperm.xlu2 %1626, %v789_v45  }
 0x89f   :  { %v1434_v47 = vpop.permute.xlu2 %1433  ;;  %v1425_v49 = vpop.permute.xlu1 %1424 }
 0x8a0   :  { %v1435_v27 = vsel %vm498_vm3, %v1434_v47, %v2633_v40  ;;  %v1426_v32 = vsel %vm498_vm3, %v1425_v49, %v2609_v21 }
 0x8a1   :  { %1442 = vrot.lane.b32.xlu1 %v1435_v27, %s1782_s20  ;;  %1436 = vrot.lane.b32.xlu0 %v1426_v32, %s1782_s20 }
 0x8a7   :  { %v1431_v52 = vpop.permute.xlu1 %1430 }
 0x8a8   :  { %v1432_v53 = vsel %vm498_vm3, %v1431_v52, %v2618_v25 }
 0x8a9   :  { %846 = vperm.xlu1 %1625, %v788_v51   ;;  %1440 = vrot.lane.b32.xlu0 %v1432_v53, %s1782_s20 }
 0x8ae   :  { %v1337_v56 = vpop.permute.xlu0 %1336 }
 0x8af   :  { %v1339_v55 = vpop.permute.xlu1 %1338  ;;  %v1344_v57 = vsel %vm498_vm3, %v1337_v56, %v2558_v61 }
 0x8b0   :  { %v1345_v20 = vsel %vm498_vm3, %v1339_v55, %v2575_v0 }
 0x8b1   :  { %841 = vperm.xlu0 %1624, %v787_v54   ;;  %1406 = vrot.lane.b32.xlu1 %v1345_v20, %s1784_s0 }
 0x8b9   :  { %1404 = vrot.lane.b32.xlu0 %v1344_v57, %s1784_s0 }
 0x8be   :  { %v1341_v39 = vpop.permute.xlu2 %1340 }
 0x8bf   :  { %v1346_v59 = vsel %vm498_vm3, %v1341_v39, %v2583_v13 }
 0x8c0   :  { %1408 = vrot.lane.b32.xlu2 %v1346_v59, %s1784_s0 }
 0x8c6   :  { %v1343_v60 = vpop.permute.xlu2 %1342 }
 0x8c7   :  { %v1347_v62 = vsel %vm498_vm3, %v1343_v60, %v2591_v48 }
 0x8c8   :  { %1410 = vrot.lane.b32.xlu2 %v1347_v62, %s1784_s0 }
 0x8ce   :  { %v837_v29 = vpop.permute.xlu2 %836 }
 0x8cf   :  { %v965_v23 = vadd.f32 %v2366_v19, %v837_v29 }
 0x8d0   :  { %1490 = vperm.xlu2 %1626, %v1484_v63  }
 0x8d1   :  { %v1609_v18 = vmul.f32 -1.442695, %v965_v23 }
 0x8d3   :  { %1731 = vpow2.f32 %v1609_v18 }
 0x8d6   :  { %v852_v28 = vpop.permute.xlu2 %851 }
 0x8d7   :  { %v974_v34 = vadd.f32 %v2372_v42, %v852_v28 }
 0x8d8   :  { %1505 = vperm.xlu2 %1626, %v1487_v1  }
 0x8d9   :  { %v1612_v6 = vmul.f32 -1.442695, %v974_v34  ;;  %v1732_v15 = vpop.eup %1731 }
 0x8da   :  { %v2707_v41 = vadd.f32 1.0, %v1732_v15 }
 0x8dc   :  { %vm1161_vm0 = vweird.f32 %v2707_v41 }
 0x8eb   :  { %v1439_v4 = vpop.permute.xlu1 %1438 }
 0x8ec   :  { %v1445_v5 = vsel %vm498_vm3, %v1439_v4, %v2600_v22 }
 0x8ed   :  { %1454 = vrot.lane.b32.xlu1 %v1445_v5, %s1785_s19 }
 0x913   :  { %v1443_v30 = vpop.permute.xlu1 %1442  ;;  %v1437_v24 = vpop.permute.xlu0 %1436 }
 0x914   :  { %v1447_v7 = vsel %vm498_vm3, %v1443_v30, %v2633_v40  ;;  %v1444_v8 = vsel %vm498_vm3, %v1437_v24, %v2609_v21 }
 0x915   :  { %1458 = vrot.lane.b32.xlu1 %v1447_v7, %s1785_s19  ;;  %1452 = vrot.lane.b32.xlu0 %v1444_v8, %s1785_s19 }
 0x91a   :  { %v1409_v37 = vpop.permute.xlu2 %1408 }
 0x91b   :  { %v1441_v14 = vpop.permute.xlu0 %1440  ;;  %v847_v2 = vpop.permute.xlu1 %846 }
 0x91c   :  { %v1446_v16 = vsel %vm498_vm3, %v1441_v14, %v2618_v25  ;;  %v971_v31 = vadd.f32 %v2370_v35, %v847_v2 }
 0x91d   :  { %1500 = vperm.xlu1 %1625, %v1486_v10   ;;  %1456 = vrot.lane.b32.xlu0 %v1446_v16, %s1785_s19  ;;  %s1545_s19 = sshll.u32 %s1786_s5, 4  ;;  %s1546_s19 = int_to_ptr.vmem [resolvable:$true] %s1545_s19 }
 0x91e   :  { %v1611_v12 = vmul.f32 -1.442695, %v971_v31 }
 0x922   :  { %v1411_v49 = vpop.permute.xlu2 %1410 }
 0x923   :  { %v842_v11 = vpop.permute.xlu0 %841  ;;  %v1407_v42 = vpop.permute.xlu1 %1406  ;;  %v1419_v53 = vmul.f32 %v1411_v49, %v2591_v48 }
 0x924   :  { %v968_v33 = vadd.f32 %v2368_v26, %v842_v11  ;;  %v1417_v50 = vmul.f32 %v1407_v42, %v2575_v0  ;;  %v1165_v11 = vand.u32 2147483647, %v2707_v41 }
 0x925   :  { %1495 = vperm.xlu0 %1624, %v1485_v58  }
 0x926   :  { %v1610_v36 = vmul.f32 -1.442695, %v968_v33  ;;  %v1421_v32 = vsel %vm648_vm7, %v1417_v50, %v2575_v0  ;;  %v1423_v0 = vsel %vm648_vm7, %v1419_v53, %v2591_v48  ;;  %vm1166_vm15 = vcmp.eq.f32.partialorder %v1165_v11, 8.507059e+37 }
 0x928   :  { %1733 = vpow2.f32 %v1610_v36 }
 0x929   :  { %1735 = vpow2.f32 %v1612_v6 }
 0x92a   :  { %1737 = vpow2.f32 %v1611_v12 }
 0x92b   :  { %1739 = vrcp.f32 %v2707_v41  ;;  %v1405_v27 = vpop.permute.xlu0 %1404 }
 0x92c   :  { %v1416_v20 = vmul.f32 %v1405_v27, %v2558_v61 }
 0x92d   :  { %1529 = vperm.xlu0 %1624, %v1526_v3   ;;  %v1167_v3 = vand.u32 2147483648, %v2707_v41 }
 0x92e   :  { %v1734_v17 = vpop.eup %1733  ;;  %v1420_v62 = vsel %vm648_vm7, %v1416_v20, %v2558_v61  ;;  %v1418_v61 = vmul.f32 %v1409_v37, %v2583_v13 }
 0x92f   :  { %v1736_v19 = vpop.eup %1735  ;;  %v2709_v26 = vadd.f32 1.0, %v1734_v17  ;;  %v1168_v31 = vor.u32 1.1754944e-38, %v1167_v3 }
 0x930   :  { %v1738_v43 = vpop.eup %1737  ;;  %v2712_v46 = vadd.f32 1.0, %v1736_v19  ;;  %v1422_v28 = vsel %vm648_vm7, %v1418_v61, %v2583_v13 }
 0x931   :  { %1741 = vrcp.f32 %v2709_v26  ;;  %v2715_v35 = vadd.f32 1.0, %v1738_v43  ;;  %v2717_v38 = vpop.eup %1739  ;;  %vm1176_vm11 = vweird.f32 %v2709_v26  ;;  %v1180_v36 = vand.u32 2147483647, %v2709_v26 }
 0x932   :  { %1743 = vrcp.f32 %v2712_v46  ;;  %v1157_v47 = vmul.f32 %v2717_v38, %v2707_v41  ;;  %vm1162_vm3 = vweird.f32 %v2717_v38  ;;  %vm1206_vm7 = vweird.f32 %v2712_v46 }
 0x933   :  { %1745 = vrcp.f32 %v2715_v35  ;;  %vm2767_vm9 = vmor %vm1161_vm0, %vm1162_vm3  ;;  %v1210_v19 = vand.u32 2147483647, %v2712_v46  ;;  %v1212_v37 = vand.u32 2147483648, %v2712_v46  ;;  %vm1181_vm12 = vcmp.eq.f32.partialorder %v1180_v36, 8.507059e+37 }
 0x934   :  { %v1158_v55 = vsub.f32 1.0, %v1157_v47  ;;  %vm1191_vm5 = vweird.f32 %v2715_v35  ;;  %v1195_v49 = vand.u32 2147483647, %v2715_v35  ;;  %vm1512_vm3 = vcmask 130160  }
 0x935   :  { %vm1211_vm6 = vcmp.eq.f32.partialorder %v1210_v19, 8.507059e+37  ;;  %vm1538_vm0 = vcmask 8192  }
 0x936   :  { %v1159_v4 = vmul.f32 %v2717_v38, %v1158_v55  ;;  %vm1196_vm8 = vcmp.eq.f32.partialorder %v1195_v49, 8.507059e+37 }
 0x937   :  { %v2721_v45 = vpop.eup %1741 }
 0x938   :  { %v2729_v52 = vpop.eup %1743  ;;  %v1172_v54 = vmul.f32 %v2721_v45, %v2709_v26  ;;  %v1160_v14 = vadd.f32 %v2717_v38, %v1159_v4  ;;  %vm1177_vm10 = vweird.f32 %v2721_v45 }
 0x939   :  { %v2735_v56 = vpop.eup %1745  ;;  %v1202_v57 = vmul.f32 %v2729_v52, %v2712_v46  ;;  %vm1207_vm13 = vweird.f32 %v2729_v52  ;;  %vm2785_vm14 = vmor %vm1176_vm11, %vm1177_vm10  ;;  %v1197_v46 = vand.u32 2147483648, %v2715_v35 }
 0x93a   :  { %v1173_v60 = vsub.f32 1.0, %v1172_v54  ;;  %v1187_v30 = vmul.f32 %v2735_v56, %v2715_v35  ;;  %v1164_v18 = vsel %vm2767_vm9, %v2717_v38, %v1160_v14  ;;  %vm2799_vm2 = vmor %vm1206_vm7, %vm1207_vm13  ;;  %vm1192_vm4 = vweird.f32 %v2735_v56 }
 0x93b   :  { %v1203_v24 = vsub.f32 1.0, %v1202_v57  ;;  %v1169_v42 = vsel %vm1166_vm15, %v1168_v31, %v1164_v18  ;;  %v1198_v55 = vor.u32 1.1754944e-38, %v1197_v46 }
 0x93c   :  { %v1174_v10 = vmul.f32 %v2721_v45, %v1173_v60  ;;  %v1188_v58 = vsub.f32 1.0, %v1187_v30 }
 0x93e   :  { %v1189_v2 = vmul.f32 %v2735_v56, %v1188_v58 }
 0x95f   :  { %v1455_v44 = vpop.permute.xlu1 %1454 }
 0x960   :  { %v1465_v51 = vmul.f32 %v1455_v44, %v1421_v32  ;;  %v1190_v44 = vadd.f32 %v2735_v56, %v1189_v2  ;;  %v1213_v32 = vor.u32 1.1754944e-38, %v1212_v37 }
 0x962   :  { %v1469_v39 = vadd.f32 %v1465_v51, %v2600_v22 }
 0x964   :  { %v1473_v7 = vsel %vm725_vm1, %v1469_v39, %v2600_v22  ;;  %v1204_v22 = vmul.f32 %v2729_v52, %v1203_v24 }
 0x965   :  { %1747 = vtanh.f32 %v1473_v7 }
 0x966   :  { %v1205_v6 = vadd.f32 %v2729_v52, %v1204_v22 }
 0x968   :  { %v1209_v47 = vsel %vm2799_vm2, %v2729_v52, %v1205_v6 }
 0x969   :  { %v1214_v20 = vsel %vm1211_vm6, %v1213_v32, %v1209_v47 }
 0x96b   :  { %v1748_v12 = vpop.eup %1747 }
 0x987   :  { %v1459_v59 = vpop.permute.xlu1 %1458  ;;  %v1453_v63 = vpop.permute.xlu0 %1452 }
 0x988   :  { %v1467_v1 = vmul.f32 %v1459_v59, %v1423_v0  ;;  %v1464_v5 = vmul.f32 %v1453_v63, %v1420_v62 }
 0x98a   :  { %v1468_v48 = vadd.f32 %v1464_v5, %v2609_v21  ;;  %v1471_v8 = vadd.f32 %v1467_v1, %v2633_v40 }
 0x98c   :  { %v1472_v16 = vsel %vm725_vm1, %v1468_v48, %v2609_v21  ;;  %v1475_v29 = vsel %vm725_vm1, %v1471_v8, %v2633_v40  ;;  %v1175_v21 = vadd.f32 %v2721_v45, %v1174_v10  ;;  %v1182_v40 = vand.u32 2147483648, %v2709_v26  ;;  %v1491_v26 = vpop.permute.xlu2 %1490 }
 0x98d   :  { %1749 = vtanh.f32 %v1472_v16 }
 0x98e   :  { %1751 = vtanh.f32 %v1475_v29  ;;  %v1179_v17 = vsel %vm2785_vm14, %v2721_v45, %v1175_v21  ;;  %v1183_v43 = vor.u32 1.1754944e-38, %v1182_v40 }
 0x98f   :  { %v1457_v33 = vpop.permute.xlu0 %1456  ;;  %v1501_v62 = vpop.permute.xlu1 %1500 }
 0x990   :  { %v1466_v34 = vmul.f32 %v1457_v33, %v1422_v28  ;;  %v1184_v45 = vsel %vm1181_vm12, %v1183_v43, %v1179_v17 }
 0x991   :  { %v1481_v9 = vmul.f32 %v1748_v12, %v1184_v45 }
 0x992   :  { %v1470_v15 = vadd.f32 %v1466_v34, %v2618_v25 }
 0x993   :  { %v1750_v41 = vpop.eup %1749 }
 0x994   :  { %v1474_v50 = vsel %vm725_vm1, %v1470_v15, %v2618_v25  ;;  %v1480_v27 = vmul.f32 %v1750_v41, %v1169_v42  ;;  %v1752_v25 = vpop.eup %1751  ;;  %vm1193_vm1 = vmor %vm1191_vm5, %vm1192_vm4  ;;  %v1506_v60 = vpop.permute.xlu2 %1505 }
 0x995   :  { %1753 = vtanh.f32 %v1474_v50  ;;  %v1194_v53 = vsel %vm1193_vm1, %v2735_v56, %v1190_v44  ;;  %v1483_v39 = vmul.f32 %v1752_v25, %v1214_v20 }
 0x996   :  { %v1508_v57 = vmul.f32 %v1491_v26, %v1480_v27  ;;  %v1199_v0 = vsel %vm1196_vm8, %v1198_v55, %v1194_v53 }
 0x997   :  { %v1496_v51 = vpop.permute.xlu0 %1495  ;;  %v1511_v4 = vmul.f32 %v1506_v60, %v1483_v39 }
 0x998   :  { %v1509_v54 = vmul.f32 %v1496_v51, %v1481_v9  ;;  %v1513_v1 = vsel %vm1512_vm3, %v1508_v57, 0.0 }
 0x999   :  { %v1518_v24 = vsel %vm1512_vm3, %v1511_v4, 0.0 }
 0x99a   :  { %v1514_v35 = vsel %vm1512_vm3, %v1509_v54, 0.0 }
 0x99b   :  { %v1754_v52 = vpop.eup %1753  ;;  %v1515_v5 = vadd.f32 %v1514_v35, %v1513_v1 }
 0x99c   :  { %v1482_v59 = vmul.f32 %v1754_v52, %v1199_v0 }
 0x99e   :  { %v1510_v63 = vmul.f32 %v1501_v62, %v1482_v59 }
 0x99f   :  { %v1530_v14 = vpop.permute.xlu0 %1529 }
 0x9a0   :  { %v1516_v30 = vsel %vm1512_vm3, %v1510_v63, 0.0  ;;  %v1532_v22 = vperm.slane %v1530_v14, 0 }
 0x9a1   :  { %v1517_v56 = vadd.f32 %v1516_v30, %v1515_v5 }
 0x9a3   :  { %v1519_v7 = vadd.f32 %v1518_v24, %v1517_v56 }
 0x9a5   :  { %v1520_v48 = vrot.slane %v1519_v7, 4 }
 0x9a7   :  { %v1521_v8 = vadd.f32 %v1520_v48, %v1519_v7 }
 0x9a9   :  { %v1522_v10 = vrot.slane %v1521_v8, 2 }
 0x9ab   :  { %v1523_v61 = vadd.f32 %v1522_v10, %v1521_v8 }
 0x9ad   :  { %v1524_v16 = vrot.slane %v1523_v61, 1 }
 0x9af   :  { %v1525_v58 = vadd.f32 %v1524_v16, %v1523_v61 }
 0x9b1   :  { %v1533_v3 = vadd.f32 %v1532_v22, %v1525_v58 }
 0x9b3   :  { %1535 = vrot.lane.b32.xlu1 %v1533_v3, %s1783_s10 }
 0xa25   :  { %v1536_v29 = vpop.permute.xlu1 %1535 }
 0xa26   :  { %1539 = vst.msk [vmem:[#allocation3] sm:$0x1] %vm1538_vm0, %v1536_v29 }
 0xa27   :  { %1550 = dma.vmem_to_hbm [thread:$0]  %s1546_s19, 16, %s1548_s21, [#allocation4]  }
 0xa28   :  { %1779 = dma.done.wait [#allocation4], 16  }
 0xa29   :  { %1780 = vsyncadd [#allocation4], 4294967280 }
 0xa2a   :  { %1555 = vsyncpa [#allocation4], 1 }

</bundles_post_ra>
